<compile_context>
chip_gen: v6e
topology: v6e:2x2x1
jax: 0.10.0
libtpu: 0.0.40
codegen_flags: <defaults>
</compile_context>

<pallas_src>
import jax
import jax.numpy as jnp
import numpy as np
from jax.experimental import pallas as pl
from jax.experimental.pallas import tpu as pltpu


# ----------------------------------------------------------------------------
# Fused Pallas kernel
# ----------------------------------------------------------------------------
def _make_fused_kernel(block_cfg):
    """Builds the fused forward kernel.

    block_cfg: tuple of has_downsample flags (one per temporal block).
    Ref order (one grid step == one batch element):
      x_ref (C_in0, T),
      per block: shift (T,T), w1 (K,C_out,C_in), b1 (C_out,1),
                 w2 (K,C_out,C_out), b2 (C_out,1), [wd (C_out,C_in), bd (C_out,1)],
      tw (1, C_last), tb (1,1), kan_c0 (G,S,O), kan_c1 (G,S,O), kan_b (1,O),
      o_ref (1, O)
    """

    def kernel(*refs):
        x_ref = refs[0]
        o_ref = refs[-1]
        _, T = x_ref.shape

        def conv_relu(h_in, w_ref, b_ref, s_ref):
            # Dilated causal conv (+chomp) + ReLU, all in VMEM.
            # Tap k needs h shifted right by (K-1-k)*d with zero fill; the shift
            # is applied incrementally as h @ S_d (S_d is an exact 0/1 matrix).
            K, C_out, _ = w_ref.shape
            acc = jnp.broadcast_to(b_ref[...], (C_out, T))        # bias as init
            shifted = h_in
            for k in range(K - 1, -1, -1):                        # K=2: unrolled
                acc = acc + jnp.dot(w_ref[k], shifted,
                                    preferred_element_type=jnp.float32)
                if k > 0:
                    shifted = jnp.dot(shifted, s_ref[...],
                                      preferred_element_type=jnp.float32)
            return jnp.maximum(acc, 0.0)

        h = x_ref[...]                                            # (C_in0, T)
        idx = 1
        for has_ds in block_cfg:
            s_ref = refs[idx]
            w1, b1, w2, b2 = refs[idx + 1], refs[idx + 2], refs[idx + 3], refs[idx + 4]
            idx += 5
            inp = h
            h = conv_relu(inp, w1, b1, s_ref)    # conv1 + chomp + relu (dropout: id)
            h = conv_relu(h, w2, b2, s_ref)      # conv2 + chomp + relu (dropout: id)
            if has_ds:                           # 1x1 downsample on the residual path
                wd, bd = refs[idx], refs[idx + 1]
                idx += 2
                res = jnp.dot(wd[...], inp, preferred_element_type=jnp.float32) + bd[...]
            else:
                res = inp
            h = jnp.maximum(h + res, 0.0)

        tw_ref, tb_ref, c0_ref, c1_ref, kb_ref = refs[idx:idx + 5]

        # transferLayer (c_out == 1), fused: the (T, 1) intermediate never hits HBM.
        y = jnp.dot(tw_ref[...], h, preferred_element_type=jnp.float32) + tb_ref[...]  # (1, T)

        # fftKAN head (NaiveFourierKAN), G statically unrolled (G=3).
        G = c0_ref.shape[0]
        acc = kb_ref[...]                                         # (1, O), bias as init
        for g in range(G):
            ang = y * jnp.float32(g + 1)
            acc = acc + jnp.dot(jnp.cos(ang), c0_ref[g],
                                preferred_element_type=jnp.float32)
            acc = acc + jnp.dot(jnp.sin(ang), c1_ref[g],
                                preferred_element_type=jnp.float32)
        o_ref[...] = acc

    return kernel


def _shift_matrix(T, d):
    """(T, T) matrix S with (h @ S)[:, t] = h[:, t - d] for t >= d, else 0."""
    S = np.zeros((T, T), np.float32)
    for t in range(d, T):
        S[t - d, t] = 1.0
    return jnp.asarray(S)


def tcn_fftkan_forward(x, params):
    """x: (B, seq_len, enc_in) -> (B, pred_len)  (c_out == 1). One fused pallas_call."""
    B, T, _ = x.shape
    x_t = jnp.transpose(x, (0, 2, 1))                             # (B, C_in, T)
    O = params["kan_b"].shape[0]

    args = [x_t]
    in_specs = [pl.BlockSpec((None,) + tuple(x_t.shape[1:]), lambda b: (b, 0, 0))]

    def add_full(a):
        # Whole (tiny) parameter resident in VMEM; same block every grid step.
        args.append(a)
        in_specs.append(pl.BlockSpec(tuple(a.shape), lambda b, _nd=a.ndim: (0,) * _nd))

    block_cfg = []
    for blk in params["blocks"]:
        has_ds = "wd" in blk
        block_cfg.append(has_ds)
        add_full(_shift_matrix(T, blk["dilation"]))
        add_full(blk["w1"])
        add_full(blk["b1"].reshape(-1, 1))
        add_full(blk["w2"])
        add_full(blk["b2"].reshape(-1, 1))
        if has_ds:
            add_full(blk["wd"])
            add_full(blk["bd"].reshape(-1, 1))
    add_full(params["tw"].T)                                       # (1, C_last)
    add_full(params["tb"].reshape(1, 1))
    add_full(params["kan_c0t"])                                    # (G, S, O)
    add_full(params["kan_c1t"])                                    # (G, S, O)
    add_full(params["kan_b"].reshape(1, -1))                       # (1, O)

    kernel = _make_fused_kernel(tuple(block_cfg))
    out = pl.pallas_call(
        kernel,
        out_shape=jax.ShapeDtypeStruct((B, 1, O), jnp.float32),
        grid=(B,),
        in_specs=in_specs,
        out_specs=pl.BlockSpec((None, 1, O), lambda b: (b, 0, 0)),
        compiler_params=pltpu.CompilerParams(
            dimension_semantics=("parallel",)),   # v7x: shard batches over 2 TCs
    )(*args)
    return out[:, 0, :]


# ----------------------------------------------------------------------------
# Pure-JAX reference for correctness checking
# ----------------------------------------------------------------------------
def _ref_conv_relu(x, w, b, dilation):
    B, C_in, T = x.shape
    K, C_out, _ = w.shape
    P = (K - 1) * dilation
    xp = jnp.pad(x, ((0, 0), (0, 0), (P, 0)))
    y = jnp.zeros((B, C_out, T), jnp.float32)
    for k in range(K):
        y = y + jnp.einsum('oc,bct->bot', w[k], xp[:, :, k * dilation:k * dilation + T])
    return jnp.maximum(y + b[None, :, None], 0.0)


def ref_forward(x, params):
    h = jnp.transpose(x, (0, 2, 1))
    for blk in params["blocks"]:
        inp = h
        h = _ref_conv_relu(inp, blk["w1"], blk["b1"], blk["dilation"])
        h = _ref_conv_relu(h, blk["w2"], blk["b2"], blk["dilation"])
        if "wd" in blk:
            res = jnp.einsum('oc,bct->bot', blk["wd"], inp) + blk["bd"][None, :, None]
        else:
            res = inp
        h = jnp.maximum(h + res, 0.0)
    h = jnp.transpose(h, (0, 2, 1))
    y = jnp.einsum('btc,co->bto', h, params["tw"]) + params["tb"][None, None, :]
    xk = y[:, :, 0]
    G = params["kan_c0t"].shape[0]
    acc = jnp.zeros((x.shape[0], params["kan_c0t"].shape[2]), jnp.float32)
    for g in range(G):
        ang = xk * (g + 1)
        acc = acc + jnp.cos(ang) @ params["kan_c0t"][g] + jnp.sin(ang) @ params["kan_c1t"][g]
    return acc + params["kan_b"][None, :]


# ----------------------------------------------------------------------------
# Deterministic parameter construction
# ----------------------------------------------------------------------------
def make_params(enc_in, num_channels, kernel_size, seq_len, pred_len, gridsize, key):
    keys = iter(jax.random.split(key, 64))
    blocks = []
    for i, out_ch in enumerate(num_channels):
        in_ch = enc_in if i == 0 else num_channels[i - 1]
        dilation = 2 ** i
        w1 = 0.01 * jax.random.normal(next(keys), (kernel_size, out_ch, in_ch), jnp.float32)
        b1 = 0.01 * jax.random.normal(next(keys), (out_ch,), jnp.float32)
        w2 = 0.01 * jax.random.normal(next(keys), (kernel_size, out_ch, out_ch), jnp.float32)
        b2 = 0.01 * jax.random.normal(next(keys), (out_ch,), jnp.float32)
        blk = dict(w1=w1, b1=b1, w2=w2, b2=b2, dilation=dilation)
        if in_ch != out_ch:   # downsample conv only when channel counts differ
            blk["wd"] = 0.01 * jax.random.normal(next(keys), (out_ch, in_ch), jnp.float32)
            blk["bd"] = 0.01 * jax.random.normal(next(keys), (out_ch,), jnp.float32)
        blocks.append(blk)

    c_out = 1
    tw = 0.1 * jax.random.normal(next(keys), (num_channels[-1], c_out), jnp.float32)
    tb = 0.1 * jax.random.normal(next(keys), (c_out,), jnp.float32)

    coeffs = jax.random.normal(next(keys), (2, pred_len, seq_len, gridsize), jnp.float32)
    coeffs = coeffs / (np.sqrt(seq_len) * np.sqrt(gridsize))
    kan_c0t = jnp.transpose(coeffs[0], (2, 1, 0))  # (G, S, O)
    kan_c1t = jnp.transpose(coeffs[1], (2, 1, 0))  # (G, S, O)
    kan_b = jnp.zeros((pred_len,), jnp.float32)

    return dict(blocks=blocks, tw=tw, tb=tb,
                kan_c0t=kan_c0t, kan_c1t=kan_c1t, kan_b=kan_b)


# ----------------------------------------------------------------------------
if __name__ == "__main__":
    # configs: enc_in=4, num_channels=[8, 8], kernel_size=2, dropout=0.2,
    #          c_out=1, seq_len=16, pred_len=4, gridsize=3
    B, seq_len, enc_in = 2, 16, 4
    num_channels = [8, 8]
    kernel_size = 2
    pred_len = 4
    gridsize = 3

    key = jax.random.PRNGKey(0)
    pkey, xkey = jax.random.split(key)
    params = make_params(enc_in, num_channels, kernel_size, seq_len, pred_len, gridsize, pkey)
    x = jax.random.normal(xkey, (B, seq_len, enc_in), jnp.float32)

    out = tcn_fftkan_forward(x, params)
    out = jax.block_until_ready(out)

    ref = jax.block_until_ready(ref_forward(x, params))
    assert out.shape == (B, pred_len), out.shape
    np.testing.assert_allclose(np.asarray(out), np.asarray(ref), rtol=1e-4, atol=1e-5)

    print("KERNEL_OK")
</pallas_src>

<mosaic_0001>
module attributes {stable_mosaic.version = 11 : i64} {
  func.func @kernel(%arg0: i32, %arg1: memref<1x4x16xf32, #tpu.memory_space<vmem>>, %arg2: memref<16x16xf32, #tpu.memory_space<vmem>>, %arg3: memref<2x8x4xf32, #tpu.memory_space<vmem>>, %arg4: memref<8x1xf32, #tpu.memory_space<vmem>>, %arg5: memref<2x8x8xf32, #tpu.memory_space<vmem>>, %arg6: memref<8x1xf32, #tpu.memory_space<vmem>>, %arg7: memref<8x4xf32, #tpu.memory_space<vmem>>, %arg8: memref<8x1xf32, #tpu.memory_space<vmem>>, %arg9: memref<16x16xf32, #tpu.memory_space<vmem>>, %arg10: memref<2x8x8xf32, #tpu.memory_space<vmem>>, %arg11: memref<8x1xf32, #tpu.memory_space<vmem>>, %arg12: memref<2x8x8xf32, #tpu.memory_space<vmem>>, %arg13: memref<8x1xf32, #tpu.memory_space<vmem>>, %arg14: memref<1x8xf32, #tpu.memory_space<vmem>>, %arg15: memref<1x1xf32, #tpu.memory_space<vmem>>, %arg16: memref<3x16x4xf32, #tpu.memory_space<vmem>>, %arg17: memref<3x16x4xf32, #tpu.memory_space<vmem>>, %arg18: memref<1x4xf32, #tpu.memory_space<vmem>>, %arg19: memref<1x1x4xf32, #tpu.memory_space<vmem>>) attributes {dimension_semantics = [#tpu.dimension_semantics<parallel>], iteration_bounds = array<i64: 2>, scalar_prefetch = 0 : i64, scratch_operands = 0 : i64, tpu.core_type = #tpu.core_type<tc>, window_params = [{transform_indices = @transform_0, window_bounds = array<i64: 1, 4, 16>}, {pipeline_mode = #tpu.pipeline_mode<synchronous>, transform_indices = @transform_1, window_bounds = array<i64: 16, 16>}, {pipeline_mode = #tpu.pipeline_mode<synchronous>, transform_indices = @transform_2, window_bounds = array<i64: 2, 8, 4>}, {pipeline_mode = #tpu.pipeline_mode<synchronous>, transform_indices = @transform_3, window_bounds = array<i64: 8, 1>}, {pipeline_mode = #tpu.pipeline_mode<synchronous>, transform_indices = @transform_4, window_bounds = array<i64: 2, 8, 8>}, {pipeline_mode = #tpu.pipeline_mode<synchronous>, transform_indices = @transform_5, window_bounds = array<i64: 8, 1>}, {pipeline_mode = #tpu.pipeline_mode<synchronous>, transform_indices = @transform_6, window_bounds = array<i64: 8, 4>}, {pipeline_mode = #tpu.pipeline_mode<synchronous>, transform_indices = @transform_7, window_bounds = array<i64: 8, 1>}, {pipeline_mode = #tpu.pipeline_mode<synchronous>, transform_indices = @transform_8, window_bounds = array<i64: 16, 16>}, {pipeline_mode = #tpu.pipeline_mode<synchronous>, transform_indices = @transform_9, window_bounds = array<i64: 2, 8, 8>}, {pipeline_mode = #tpu.pipeline_mode<synchronous>, transform_indices = @transform_10, window_bounds = array<i64: 8, 1>}, {pipeline_mode = #tpu.pipeline_mode<synchronous>, transform_indices = @transform_11, window_bounds = array<i64: 2, 8, 8>}, {pipeline_mode = #tpu.pipeline_mode<synchronous>, transform_indices = @transform_12, window_bounds = array<i64: 8, 1>}, {pipeline_mode = #tpu.pipeline_mode<synchronous>, transform_indices = @transform_13, window_bounds = array<i64: 1, 8>}, {pipeline_mode = #tpu.pipeline_mode<synchronous>, transform_indices = @transform_14, window_bounds = array<i64: 1, 1>}, {pipeline_mode = #tpu.pipeline_mode<synchronous>, transform_indices = @transform_15, window_bounds = array<i64: 3, 16, 4>}, {pipeline_mode = #tpu.pipeline_mode<synchronous>, transform_indices = @transform_16, window_bounds = array<i64: 3, 16, 4>}, {pipeline_mode = #tpu.pipeline_mode<synchronous>, transform_indices = @transform_17, window_bounds = array<i64: 1, 4>}, {transform_indices = @transform_18, window_bounds = array<i64: 1, 1, 4>}]} {
    %c0 = arith.constant 0 : index
    %c0_0 = arith.constant 0 : index
    %c0_1 = arith.constant 0 : index
    %0 = vector.load %arg1[%c0, %c0_0, %c0_1] : memref<1x4x16xf32, #tpu.memory_space<vmem>>, vector<1x4x16xf32>
    %1 = vector.shape_cast %0 : vector<1x4x16xf32> to vector<4x16xf32>
    %c0_2 = arith.constant 0 : index
    %c0_3 = arith.constant 0 : index
    %2 = vector.load %arg4[%c0_2, %c0_3] : memref<8x1xf32, #tpu.memory_space<vmem>>, vector<8x1xf32>
    %3 = vector.shape_cast %2 : vector<8x1xf32> to vector<8x1xf32>
    %4 = vector.broadcast %3 : vector<8x1xf32> to vector<8x16xf32>
    %c1 = arith.constant 1 : index
    %c0_4 = arith.constant 0 : index
    %c0_5 = arith.constant 0 : index
    %5 = vector.load %arg3[%c1, %c0_4, %c0_5] : memref<2x8x4xf32, #tpu.memory_space<vmem>>, vector<1x8x4xf32>
    %6 = vector.shape_cast %5 : vector<1x8x4xf32> to vector<8x4xf32>
    %cst = arith.constant dense<0.000000e+00> : vector<8x16xf32>
    %7 = tpu.matmul %6, %1, %cst {dimension_numbers = #tpu.dot_dimension_numbers<[1], [0], [0], [1], [0, 0, 1, 1], [], []>} : vector<8x4xf32>, vector<4x16xf32>, vector<8x16xf32> -> vector<8x16xf32>
    %8 = arith.addf %4, %7 : vector<8x16xf32>
    %c0_6 = arith.constant 0 : index
    %c0_7 = arith.constant 0 : index
    %9 = vector.load %arg2[%c0_6, %c0_7] : memref<16x16xf32, #tpu.memory_space<vmem>>, vector<16x16xf32>
    %cst_8 = arith.constant dense<0.000000e+00> : vector<4x16xf32>
    %10 = tpu.matmul %1, %9, %cst_8 {dimension_numbers = #tpu.dot_dimension_numbers<[1], [0], [0], [1], [0, 0, 1, 1], [], []>} : vector<4x16xf32>, vector<16x16xf32>, vector<4x16xf32> -> vector<4x16xf32>
    %c0_9 = arith.constant 0 : index
    %c0_10 = arith.constant 0 : index
    %c0_11 = arith.constant 0 : index
    %11 = vector.load %arg3[%c0_9, %c0_10, %c0_11] : memref<2x8x4xf32, #tpu.memory_space<vmem>>, vector<1x8x4xf32>
    %12 = vector.shape_cast %11 : vector<1x8x4xf32> to vector<8x4xf32>
    %cst_12 = arith.constant dense<0.000000e+00> : vector<8x16xf32>
    %13 = tpu.matmul %12, %10, %cst_12 {dimension_numbers = #tpu.dot_dimension_numbers<[1], [0], [0], [1], [0, 0, 1, 1], [], []>} : vector<8x4xf32>, vector<4x16xf32>, vector<8x16xf32> -> vector<8x16xf32>
    %14 = arith.addf %8, %13 : vector<8x16xf32>
    %cst_13 = arith.constant 0.000000e+00 : f32
    %15 = vector.broadcast %cst_13 : f32 to vector<8x16xf32>
    %16 = arith.maximumf %14, %15 : vector<8x16xf32>
    %c0_14 = arith.constant 0 : index
    %c0_15 = arith.constant 0 : index
    %17 = vector.load %arg6[%c0_14, %c0_15] : memref<8x1xf32, #tpu.memory_space<vmem>>, vector<8x1xf32>
    %18 = vector.shape_cast %17 : vector<8x1xf32> to vector<8x1xf32>
    %19 = vector.broadcast %18 : vector<8x1xf32> to vector<8x16xf32>
    %c1_16 = arith.constant 1 : index
    %c0_17 = arith.constant 0 : index
    %c0_18 = arith.constant 0 : index
    %20 = vector.load %arg5[%c1_16, %c0_17, %c0_18] : memref<2x8x8xf32, #tpu.memory_space<vmem>>, vector<1x8x8xf32>
    %21 = vector.shape_cast %20 : vector<1x8x8xf32> to vector<8x8xf32>
    %cst_19 = arith.constant dense<0.000000e+00> : vector<8x16xf32>
    %22 = tpu.matmul %21, %16, %cst_19 {dimension_numbers = #tpu.dot_dimension_numbers<[1], [0], [0], [1], [0, 0, 1, 1], [], []>} : vector<8x8xf32>, vector<8x16xf32>, vector<8x16xf32> -> vector<8x16xf32>
    %23 = arith.addf %19, %22 : vector<8x16xf32>
    %c0_20 = arith.constant 0 : index
    %c0_21 = arith.constant 0 : index
    %24 = vector.load %arg2[%c0_20, %c0_21] : memref<16x16xf32, #tpu.memory_space<vmem>>, vector<16x16xf32>
    %cst_22 = arith.constant dense<0.000000e+00> : vector<8x16xf32>
    %25 = tpu.matmul %16, %24, %cst_22 {dimension_numbers = #tpu.dot_dimension_numbers<[1], [0], [0], [1], [0, 0, 1, 1], [], []>} : vector<8x16xf32>, vector<16x16xf32>, vector<8x16xf32> -> vector<8x16xf32>
    %c0_23 = arith.constant 0 : index
    %c0_24 = arith.constant 0 : index
    %c0_25 = arith.constant 0 : index
    %26 = vector.load %arg5[%c0_23, %c0_24, %c0_25] : memref<2x8x8xf32, #tpu.memory_space<vmem>>, vector<1x8x8xf32>
    %27 = vector.shape_cast %26 : vector<1x8x8xf32> to vector<8x8xf32>
    %cst_26 = arith.constant dense<0.000000e+00> : vector<8x16xf32>
    %28 = tpu.matmul %27, %25, %cst_26 {dimension_numbers = #tpu.dot_dimension_numbers<[1], [0], [0], [1], [0, 0, 1, 1], [], []>} : vector<8x8xf32>, vector<8x16xf32>, vector<8x16xf32> -> vector<8x16xf32>
    %29 = arith.addf %23, %28 : vector<8x16xf32>
    %cst_27 = arith.constant 0.000000e+00 : f32
    %30 = vector.broadcast %cst_27 : f32 to vector<8x16xf32>
    %31 = arith.maximumf %29, %30 : vector<8x16xf32>
    %c0_28 = arith.constant 0 : index
    %c0_29 = arith.constant 0 : index
    %32 = vector.load %arg7[%c0_28, %c0_29] : memref<8x4xf32, #tpu.memory_space<vmem>>, vector<8x4xf32>
    %cst_30 = arith.constant dense<0.000000e+00> : vector<8x16xf32>
    %33 = tpu.matmul %32, %1, %cst_30 {dimension_numbers = #tpu.dot_dimension_numbers<[1], [0], [0], [1], [0, 0, 1, 1], [], []>} : vector<8x4xf32>, vector<4x16xf32>, vector<8x16xf32> -> vector<8x16xf32>
    %c0_31 = arith.constant 0 : index
    %c0_32 = arith.constant 0 : index
    %34 = vector.load %arg8[%c0_31, %c0_32] : memref<8x1xf32, #tpu.memory_space<vmem>>, vector<8x1xf32>
    %35 = vector.broadcast %34 : vector<8x1xf32> to vector<8x16xf32>
    %36 = arith.addf %33, %35 : vector<8x16xf32>
    %37 = arith.addf %31, %36 : vector<8x16xf32>
    %cst_33 = arith.constant 0.000000e+00 : f32
    %38 = vector.broadcast %cst_33 : f32 to vector<8x16xf32>
    %39 = arith.maximumf %37, %38 : vector<8x16xf32>
    %c0_34 = arith.constant 0 : index
    %c0_35 = arith.constant 0 : index
    %40 = vector.load %arg11[%c0_34, %c0_35] : memref<8x1xf32, #tpu.memory_space<vmem>>, vector<8x1xf32>
    %41 = vector.shape_cast %40 : vector<8x1xf32> to vector<8x1xf32>
    %42 = vector.broadcast %41 : vector<8x1xf32> to vector<8x16xf32>
    %c1_36 = arith.constant 1 : index
    %c0_37 = arith.constant 0 : index
    %c0_38 = arith.constant 0 : index
    %43 = vector.load %arg10[%c1_36, %c0_37, %c0_38] : memref<2x8x8xf32, #tpu.memory_space<vmem>>, vector<1x8x8xf32>
    %44 = vector.shape_cast %43 : vector<1x8x8xf32> to vector<8x8xf32>
    %cst_39 = arith.constant dense<0.000000e+00> : vector<8x16xf32>
    %45 = tpu.matmul %44, %39, %cst_39 {dimension_numbers = #tpu.dot_dimension_numbers<[1], [0], [0], [1], [0, 0, 1, 1], [], []>} : vector<8x8xf32>, vector<8x16xf32>, vector<8x16xf32> -> vector<8x16xf32>
    %46 = arith.addf %42, %45 : vector<8x16xf32>
    %c0_40 = arith.constant 0 : index
    %c0_41 = arith.constant 0 : index
    %47 = vector.load %arg9[%c0_40, %c0_41] : memref<16x16xf32, #tpu.memory_space<vmem>>, vector<16x16xf32>
    %cst_42 = arith.constant dense<0.000000e+00> : vector<8x16xf32>
    %48 = tpu.matmul %39, %47, %cst_42 {dimension_numbers = #tpu.dot_dimension_numbers<[1], [0], [0], [1], [0, 0, 1, 1], [], []>} : vector<8x16xf32>, vector<16x16xf32>, vector<8x16xf32> -> vector<8x16xf32>
    %c0_43 = arith.constant 0 : index
    %c0_44 = arith.constant 0 : index
    %c0_45 = arith.constant 0 : index
    %49 = vector.load %arg10[%c0_43, %c0_44, %c0_45] : memref<2x8x8xf32, #tpu.memory_space<vmem>>, vector<1x8x8xf32>
    %50 = vector.shape_cast %49 : vector<1x8x8xf32> to vector<8x8xf32>
    %cst_46 = arith.constant dense<0.000000e+00> : vector<8x16xf32>
    %51 = tpu.matmul %50, %48, %cst_46 {dimension_numbers = #tpu.dot_dimension_numbers<[1], [0], [0], [1], [0, 0, 1, 1], [], []>} : vector<8x8xf32>, vector<8x16xf32>, vector<8x16xf32> -> vector<8x16xf32>
    %52 = arith.addf %46, %51 : vector<8x16xf32>
    %cst_47 = arith.constant 0.000000e+00 : f32
    %53 = vector.broadcast %cst_47 : f32 to vector<8x16xf32>
    %54 = arith.maximumf %52, %53 : vector<8x16xf32>
    %c0_48 = arith.constant 0 : index
    %c0_49 = arith.constant 0 : index
    %55 = vector.load %arg13[%c0_48, %c0_49] : memref<8x1xf32, #tpu.memory_space<vmem>>, vector<8x1xf32>
    %56 = vector.shape_cast %55 : vector<8x1xf32> to vector<8x1xf32>
    %57 = vector.broadcast %56 : vector<8x1xf32> to vector<8x16xf32>
    %c1_50 = arith.constant 1 : index
    %c0_51 = arith.constant 0 : index
    %c0_52 = arith.constant 0 : index
    %58 = vector.load %arg12[%c1_50, %c0_51, %c0_52] : memref<2x8x8xf32, #tpu.memory_space<vmem>>, vector<1x8x8xf32>
    %59 = vector.shape_cast %58 : vector<1x8x8xf32> to vector<8x8xf32>
    %cst_53 = arith.constant dense<0.000000e+00> : vector<8x16xf32>
    %60 = tpu.matmul %59, %54, %cst_53 {dimension_numbers = #tpu.dot_dimension_numbers<[1], [0], [0], [1], [0, 0, 1, 1], [], []>} : vector<8x8xf32>, vector<8x16xf32>, vector<8x16xf32> -> vector<8x16xf32>
    %61 = arith.addf %57, %60 : vector<8x16xf32>
    %c0_54 = arith.constant 0 : index
    %c0_55 = arith.constant 0 : index
    %62 = vector.load %arg9[%c0_54, %c0_55] : memref<16x16xf32, #tpu.memory_space<vmem>>, vector<16x16xf32>
    %cst_56 = arith.constant dense<0.000000e+00> : vector<8x16xf32>
    %63 = tpu.matmul %54, %62, %cst_56 {dimension_numbers = #tpu.dot_dimension_numbers<[1], [0], [0], [1], [0, 0, 1, 1], [], []>} : vector<8x16xf32>, vector<16x16xf32>, vector<8x16xf32> -> vector<8x16xf32>
    %c0_57 = arith.constant 0 : index
    %c0_58 = arith.constant 0 : index
    %c0_59 = arith.constant 0 : index
    %64 = vector.load %arg12[%c0_57, %c0_58, %c0_59] : memref<2x8x8xf32, #tpu.memory_space<vmem>>, vector<1x8x8xf32>
    %65 = vector.shape_cast %64 : vector<1x8x8xf32> to vector<8x8xf32>
    %cst_60 = arith.constant dense<0.000000e+00> : vector<8x16xf32>
    %66 = tpu.matmul %65, %63, %cst_60 {dimension_numbers = #tpu.dot_dimension_numbers<[1], [0], [0], [1], [0, 0, 1, 1], [], []>} : vector<8x8xf32>, vector<8x16xf32>, vector<8x16xf32> -> vector<8x16xf32>
    %67 = arith.addf %61, %66 : vector<8x16xf32>
    %cst_61 = arith.constant 0.000000e+00 : f32
    %68 = vector.broadcast %cst_61 : f32 to vector<8x16xf32>
    %69 = arith.maximumf %67, %68 : vector<8x16xf32>
    %70 = arith.addf %69, %39 : vector<8x16xf32>
    %cst_62 = arith.constant 0.000000e+00 : f32
    %71 = vector.broadcast %cst_62 : f32 to vector<8x16xf32>
    %72 = arith.maximumf %70, %71 : vector<8x16xf32>
    %c0_63 = arith.constant 0 : index
    %c0_64 = arith.constant 0 : index
    %73 = vector.load %arg14[%c0_63, %c0_64] : memref<1x8xf32, #tpu.memory_space<vmem>>, vector<1x8xf32>
    %cst_65 = arith.constant dense<0.000000e+00> : vector<1x16xf32>
    %74 = tpu.matmul %73, %72, %cst_65 {dimension_numbers = #tpu.dot_dimension_numbers<[1], [0], [0], [1], [0, 0, 1, 1], [], []>} : vector<1x8xf32>, vector<8x16xf32>, vector<1x16xf32> -> vector<1x16xf32>
    %c0_66 = arith.constant 0 : index
    %c0_67 = arith.constant 0 : index
    %75 = vector.load %arg15[%c0_66, %c0_67] : memref<1x1xf32, #tpu.memory_space<vmem>>, vector<1x1xf32>
    %76 = vector.broadcast %75 : vector<1x1xf32> to vector<1x16xf32>
    %77 = arith.addf %74, %76 : vector<1x16xf32>
    %c0_68 = arith.constant 0 : index
    %c0_69 = arith.constant 0 : index
    %78 = vector.load %arg18[%c0_68, %c0_69] : memref<1x4xf32, #tpu.memory_space<vmem>>, vector<1x4xf32>
    %cst_70 = arith.constant 1.000000e+00 : f32
    %79 = vector.broadcast %cst_70 : f32 to vector<1x16xf32>
    %80 = arith.mulf %77, %79 : vector<1x16xf32>
    %81 = math.cos %80 : vector<1x16xf32>
    %c0_71 = arith.constant 0 : index
    %c0_72 = arith.constant 0 : index
    %c0_73 = arith.constant 0 : index
    %82 = vector.load %arg16[%c0_71, %c0_72, %c0_73] : memref<3x16x4xf32, #tpu.memory_space<vmem>>, vector<1x16x4xf32>
    %83 = vector.shape_cast %82 : vector<1x16x4xf32> to vector<16x4xf32>
    %cst_74 = arith.constant dense<0.000000e+00> : vector<1x4xf32>
    %84 = tpu.matmul %81, %83, %cst_74 {dimension_numbers = #tpu.dot_dimension_numbers<[1], [0], [0], [1], [0, 0, 1, 1], [], []>} : vector<1x16xf32>, vector<16x4xf32>, vector<1x4xf32> -> vector<1x4xf32>
    %85 = arith.addf %78, %84 : vector<1x4xf32>
    %86 = math.sin %80 : vector<1x16xf32>
    %c0_75 = arith.constant 0 : index
    %c0_76 = arith.constant 0 : index
    %c0_77 = arith.constant 0 : index
    %87 = vector.load %arg17[%c0_75, %c0_76, %c0_77] : memref<3x16x4xf32, #tpu.memory_space<vmem>>, vector<1x16x4xf32>
    %88 = vector.shape_cast %87 : vector<1x16x4xf32> to vector<16x4xf32>
    %cst_78 = arith.constant dense<0.000000e+00> : vector<1x4xf32>
    %89 = tpu.matmul %86, %88, %cst_78 {dimension_numbers = #tpu.dot_dimension_numbers<[1], [0], [0], [1], [0, 0, 1, 1], [], []>} : vector<1x16xf32>, vector<16x4xf32>, vector<1x4xf32> -> vector<1x4xf32>
    %90 = arith.addf %85, %89 : vector<1x4xf32>
    %cst_79 = arith.constant 2.000000e+00 : f32
    %91 = vector.broadcast %cst_79 : f32 to vector<1x16xf32>
    %92 = arith.mulf %77, %91 : vector<1x16xf32>
    %93 = math.cos %92 : vector<1x16xf32>
    %c1_80 = arith.constant 1 : index
    %c0_81 = arith.constant 0 : index
    %c0_82 = arith.constant 0 : index
    %94 = vector.load %arg16[%c1_80, %c0_81, %c0_82] : memref<3x16x4xf32, #tpu.memory_space<vmem>>, vector<1x16x4xf32>
    %95 = vector.shape_cast %94 : vector<1x16x4xf32> to vector<16x4xf32>
    %cst_83 = arith.constant dense<0.000000e+00> : vector<1x4xf32>
    %96 = tpu.matmul %93, %95, %cst_83 {dimension_numbers = #tpu.dot_dimension_numbers<[1], [0], [0], [1], [0, 0, 1, 1], [], []>} : vector<1x16xf32>, vector<16x4xf32>, vector<1x4xf32> -> vector<1x4xf32>
    %97 = arith.addf %90, %96 : vector<1x4xf32>
    %98 = math.sin %92 : vector<1x16xf32>
    %c1_84 = arith.constant 1 : index
    %c0_85 = arith.constant 0 : index
    %c0_86 = arith.constant 0 : index
    %99 = vector.load %arg17[%c1_84, %c0_85, %c0_86] : memref<3x16x4xf32, #tpu.memory_space<vmem>>, vector<1x16x4xf32>
    %100 = vector.shape_cast %99 : vector<1x16x4xf32> to vector<16x4xf32>
    %cst_87 = arith.constant dense<0.000000e+00> : vector<1x4xf32>
    %101 = tpu.matmul %98, %100, %cst_87 {dimension_numbers = #tpu.dot_dimension_numbers<[1], [0], [0], [1], [0, 0, 1, 1], [], []>} : vector<1x16xf32>, vector<16x4xf32>, vector<1x4xf32> -> vector<1x4xf32>
    %102 = arith.addf %97, %101 : vector<1x4xf32>
    %cst_88 = arith.constant 3.000000e+00 : f32
    %103 = vector.broadcast %cst_88 : f32 to vector<1x16xf32>
    %104 = arith.mulf %77, %103 : vector<1x16xf32>
    %105 = math.cos %104 : vector<1x16xf32>
    %c2 = arith.constant 2 : index
    %c0_89 = arith.constant 0 : index
    %c0_90 = arith.constant 0 : index
    %106 = vector.load %arg16[%c2, %c0_89, %c0_90] : memref<3x16x4xf32, #tpu.memory_space<vmem>>, vector<1x16x4xf32>
    %107 = vector.shape_cast %106 : vector<1x16x4xf32> to vector<16x4xf32>
    %cst_91 = arith.constant dense<0.000000e+00> : vector<1x4xf32>
    %108 = tpu.matmul %105, %107, %cst_91 {dimension_numbers = #tpu.dot_dimension_numbers<[1], [0], [0], [1], [0, 0, 1, 1], [], []>} : vector<1x16xf32>, vector<16x4xf32>, vector<1x4xf32> -> vector<1x4xf32>
    %109 = arith.addf %102, %108 : vector<1x4xf32>
    %110 = math.sin %104 : vector<1x16xf32>
    %c2_92 = arith.constant 2 : index
    %c0_93 = arith.constant 0 : index
    %c0_94 = arith.constant 0 : index
    %111 = vector.load %arg17[%c2_92, %c0_93, %c0_94] : memref<3x16x4xf32, #tpu.memory_space<vmem>>, vector<1x16x4xf32>
    %112 = vector.shape_cast %111 : vector<1x16x4xf32> to vector<16x4xf32>
    %cst_95 = arith.constant dense<0.000000e+00> : vector<1x4xf32>
    %113 = tpu.matmul %110, %112, %cst_95 {dimension_numbers = #tpu.dot_dimension_numbers<[1], [0], [0], [1], [0, 0, 1, 1], [], []>} : vector<1x16xf32>, vector<16x4xf32>, vector<1x4xf32> -> vector<1x4xf32>
    %114 = arith.addf %109, %113 : vector<1x4xf32>
    %c0_96 = arith.constant 0 : index
    %c0_97 = arith.constant 0 : index
    %c0_98 = arith.constant 0 : index
    %115 = vector.load %arg19[%c0_96, %c0_97, %c0_98] : memref<1x1x4xf32, #tpu.memory_space<vmem>>, vector<1x1x4xf32>
    %116 = vector.shape_cast %115 : vector<1x1x4xf32> to vector<1x4xf32>
    %117 = vector.shape_cast %114 : vector<1x4xf32> to vector<1x1x4xf32>
    tpu.vector_store %arg19[%c0_96, %c0_97, %c0_98], %117 {strides = array<i32>} : memref<1x1x4xf32, #tpu.memory_space<vmem>>, vector<1x1x4xf32>,
    return
  }
  func.func @transform_0(%arg0: i32) -> (i32, i32, i32) {
    %c0_i32 = arith.constant 0 : i32
    %c0_i32_0 = arith.constant 0 : i32
    %c0_i32_1 = arith.constant 0 : i32
    return %arg0, %c0_i32, %c0_i32_0 : i32, i32, i32
  }
  func.func @transform_1(%arg0: i32) -> (i32, i32) {
    %c0_i32 = arith.constant 0 : i32
    %c0_i32_0 = arith.constant 0 : i32
    %c0_i32_1 = arith.constant 0 : i32
    return %c0_i32, %c0_i32_0 : i32, i32
  }
  func.func @transform_2(%arg0: i32) -> (i32, i32, i32) {
    %c0_i32 = arith.constant 0 : i32
    %c0_i32_0 = arith.constant 0 : i32
    %c0_i32_1 = arith.constant 0 : i32
    %c0_i32_2 = arith.constant 0 : i32
    return %c0_i32, %c0_i32_0, %c0_i32_1 : i32, i32, i32
  }
  func.func @transform_3(%arg0: i32) -> (i32, i32) {
    %c0_i32 = arith.constant 0 : i32
    %c0_i32_0 = arith.constant 0 : i32
    %c0_i32_1 = arith.constant 0 : i32
    return %c0_i32, %c0_i32_0 : i32, i32
  }
  func.func @transform_4(%arg0: i32) -> (i32, i32, i32) {
    %c0_i32 = arith.constant 0 : i32
    %c0_i32_0 = arith.constant 0 : i32
    %c0_i32_1 = arith.constant 0 : i32
    %c0_i32_2 = arith.constant 0 : i32
    return %c0_i32, %c0_i32_0, %c0_i32_1 : i32, i32, i32
  }
  func.func @transform_5(%arg0: i32) -> (i32, i32) {
    %c0_i32 = arith.constant 0 : i32
    %c0_i32_0 = arith.constant 0 : i32
    %c0_i32_1 = arith.constant 0 : i32
    return %c0_i32, %c0_i32_0 : i32, i32
  }
  func.func @transform_6(%arg0: i32) -> (i32, i32) {
    %c0_i32 = arith.constant 0 : i32
    %c0_i32_0 = arith.constant 0 : i32
    %c0_i32_1 = arith.constant 0 : i32
    return %c0_i32, %c0_i32_0 : i32, i32
  }
  func.func @transform_7(%arg0: i32) -> (i32, i32) {
    %c0_i32 = arith.constant 0 : i32
    %c0_i32_0 = arith.constant 0 : i32
    %c0_i32_1 = arith.constant 0 : i32
    return %c0_i32, %c0_i32_0 : i32, i32
  }
  func.func @transform_8(%arg0: i32) -> (i32, i32) {
    %c0_i32 = arith.constant 0 : i32
    %c0_i32_0 = arith.constant 0 : i32
    %c0_i32_1 = arith.constant 0 : i32
    return %c0_i32, %c0_i32_0 : i32, i32
  }
  func.func @transform_9(%arg0: i32) -> (i32, i32, i32) {
    %c0_i32 = arith.constant 0 : i32
    %c0_i32_0 = arith.constant 0 : i32
    %c0_i32_1 = arith.constant 0 : i32
    %c0_i32_2 = arith.constant 0 : i32
    return %c0_i32, %c0_i32_0, %c0_i32_1 : i32, i32, i32
  }
  func.func @transform_10(%arg0: i32) -> (i32, i32) {
    %c0_i32 = arith.constant 0 : i32
    %c0_i32_0 = arith.constant 0 : i32
    %c0_i32_1 = arith.constant 0 : i32
    return %c0_i32, %c0_i32_0 : i32, i32
  }
  func.func @transform_11(%arg0: i32) -> (i32, i32, i32) {
    %c0_i32 = arith.constant 0 : i32
    %c0_i32_0 = arith.constant 0 : i32
    %c0_i32_1 = arith.constant 0 : i32
    %c0_i32_2 = arith.constant 0 : i32
    return %c0_i32, %c0_i32_0, %c0_i32_1 : i32, i32, i32
  }
  func.func @transform_12(%arg0: i32) -> (i32, i32) {
    %c0_i32 = arith.constant 0 : i32
    %c0_i32_0 = arith.constant 0 : i32
    %c0_i32_1 = arith.constant 0 : i32
    return %c0_i32, %c0_i32_0 : i32, i32
  }
  func.func @transform_13(%arg0: i32) -> (i32, i32) {
    %c0_i32 = arith.constant 0 : i32
    %c0_i32_0 = arith.constant 0 : i32
    %c0_i32_1 = arith.constant 0 : i32
    return %c0_i32, %c0_i32_0 : i32, i32
  }
  func.func @transform_14(%arg0: i32) -> (i32, i32) {
    %c0_i32 = arith.constant 0 : i32
    %c0_i32_0 = arith.constant 0 : i32
    %c0_i32_1 = arith.constant 0 : i32
    return %c0_i32, %c0_i32_0 : i32, i32
  }
  func.func @transform_15(%arg0: i32) -> (i32, i32, i32) {
    %c0_i32 = arith.constant 0 : i32
    %c0_i32_0 = arith.constant 0 : i32
    %c0_i32_1 = arith.constant 0 : i32
    %c0_i32_2 = arith.constant 0 : i32
    return %c0_i32, %c0_i32_0, %c0_i32_1 : i32, i32, i32
  }
  func.func @transform_16(%arg0: i32) -> (i32, i32, i32) {
    %c0_i32 = arith.constant 0 : i32
    %c0_i32_0 = arith.constant 0 : i32
    %c0_i32_1 = arith.constant 0 : i32
    %c0_i32_2 = arith.constant 0 : i32
    return %c0_i32, %c0_i32_0, %c0_i32_1 : i32, i32, i32
  }
  func.func @transform_17(%arg0: i32) -> (i32, i32) {
    %c0_i32 = arith.constant 0 : i32
    %c0_i32_0 = arith.constant 0 : i32
    %c0_i32_1 = arith.constant 0 : i32
    return %c0_i32, %c0_i32_0 : i32, i32
  }
  func.func @transform_18(%arg0: i32) -> (i32, i32, i32) {
    %c0_i32 = arith.constant 0 : i32
    %c0_i32_0 = arith.constant 0 : i32
    %c0_i32_1 = arith.constant 0 : i32
    return %arg0, %c0_i32, %c0_i32_0 : i32, i32, i32
  }
}

</mosaic_0001>

<bundles_post_ra>
// kernel: tpu_custom_call.1
= control target key start
LH: loop header
LB: loop body
LE: loop exit
PB: predicated region body
PF: predicated region fallthrough
CT: control target
= control target key end

     0   :  { %s3754_s0 = inlined_call_operand.vmem [shape: f32[2,4,16], index: 0, kind: input, shape index: {}]   ;;  %s3755_s1 = inlined_call_operand.vmem [shape: f32[16,16], index: 1, kind: input, shape index: {}]   ;;  %s3756_s2 = inlined_call_operand.vmem [shape: f32[2,8,4], index: 2, kind: input, shape index: {}]   ;;  %s3757_s3 = inlined_call_operand.vmem [shape: f32[8,1], index: 3, kind: input, shape index: {}]   ;;  %s3758_s4 = inlined_call_operand.vmem [shape: f32[2,8,8], index: 4, kind: input, shape index: {}]   ;;  %s3759_s5 = inlined_call_operand.vmem [shape: f32[8,1], index: 5, kind: input, shape index: {}]   ;;  %s3760_s6 = inlined_call_operand.vmem [shape: f32[8,4], index: 6, kind: input, shape index: {}]   ;;  %s3761_s7 = inlined_call_operand.vmem [shape: f32[8,1], index: 7, kind: input, shape index: {}]   ;;  %s3762_s8 = inlined_call_operand.vmem [shape: f32[16,16], index: 8, kind: input, shape index: {}]   ;;  %s3763_s9 = inlined_call_operand.vmem [shape: f32[2,8,8], index: 9, kind: input, shape index: {}]   ;;  %s3764_s10 = inlined_call_operand.vmem [shape: f32[8,1], index: 10, kind: input, shape index: {}]   ;;  %s3765_s11 = inlined_call_operand.vmem [shape: f32[2,8,8], index: 11, kind: input, shape index: {}]   ;;  %s3766_s12 = inlined_call_operand.vmem [shape: f32[8,1], index: 12, kind: input, shape index: {}]   ;;  %s3767_s13 = inlined_call_operand.vmem [shape: f32[1,8], index: 13, kind: input, shape index: {}]   ;;  %s3768_s14 = inlined_call_operand.<no memory space> [shape: f32[1,1], index: 14, kind: input, shape index: {}]   ;;  %s3769_s15 = inlined_call_operand.vmem [shape: f32[3,16,4], index: 15, kind: input, shape index: {}]   ;;  %s3770_s16 = inlined_call_operand.vmem [shape: f32[3,16,4], index: 16, kind: input, shape index: {}]   ;;  %s3771_s17 = inlined_call_operand.vmem [shape: f32[1,4], index: 17, kind: input, shape index: {}]   ;;  %s3772_s18 = inlined_call_operand.hbm [shape: f32[2,1,4], index: 18, kind: output, shape index: {}]  }
   0x1   :  { %3779 = sst [smem:[#allocation9_spill]] %s3754_s0  ;;  %v23_v0 = vstv %s3768_s14 }
   0x2   :  { %3780 = sst [smem:[#allocation10_spill]] %s3755_s1  ;;  %24 = vst [vmem:[#allocation2] sm:$0x1] %v23_v0 }
   0x3   :  { %3781 = sst [smem:[#allocation11_spill]] %s3756_s2 }
   0x4   :  { %3782 = sst [smem:[#allocation12_spill]] %s3757_s3 }
   0x5   :  { %3783 = sst [smem:[#allocation13_spill]] %s3758_s4 }
   0x6   :  { %3784 = sst [smem:[#allocation14_spill]] %s3759_s5 }
   0x7   :  { %25 = vsyncpa [#allocation4], 0 }
   0x8   :  { %27 = vsyncpa [#allocation4 + $0x1], 0  ;;  %s3313_s29 = smov 0   ;;  %s3315_s30 = smov 0  }
   0x9   :  { %s3317_s0 = smov 0   ;;  %s3319_s19 = smov 0  }
   0xa LB: > { %3785 = sst [smem:[#allocation6_spill]] %s3199_s0  ;;  %s3334_s14 = sadd.s32 4294967295, %s3203_s19   ;;  %s3203_s19 = sphi %s3319_s19, %s3799_s19   ;;  %s3199_s0 = sphi %s3317_s0, %s3801_s0   ;;  %s3195_s30 = sphi %s3315_s30, %s3803_s30   ;;  %s3191_s29 = sphi %s3313_s29, %s3802_s29  }
   0xb   : > { %s2832_s1 = sadd.s32 4294967294, %s3203_s19   ;;  %s3338_s20 = sadd.s32 1, %s3203_s19  }
   0xc   : > { %3786 = sst [smem:[#allocation7_spill]] %s3338_s20  ;;  %s423_s21 = sadd.s32 1, %s3199_s0 }
   0xd   : > { %s420_s22 = ssub.s32 %s3203_s19, %s3338_s20  ;;  %p433_p0 = scmp.ne.s32.totalorder %s3199_s0, %s3195_s30 }
   0xe   : > { %p421_p1 = scmp.eq.s32.totalorder %s420_s22, 0  ;;  %p434_p2 = scmp.eq.s32.totalorder %s3334_s14, 1 }
   0xf   : > { %p439_p3 = scmp.ne.s32.totalorder %s3195_s30, %s3191_s29  ;;  %p440_p4 = scmp.eq.s32.totalorder %s2832_s1, 1 }
  0x10   : > { %s3349_s2 = scalar_select %p421_p1, %s3199_s0, %s423_s21  }
  0x11   : > { %p3351_p5 = por %p434_p2, %p433_p0  ;;  %p3355_p6 = por %p440_p4, %p439_p3 }
  0x12   : > { %3787 = sst [smem:[#allocation8_spill]] %s3349_s2  ;;  %p2835_p7 = scmp.ge.s32.totalorder %s3203_s19, 1 }
  0x13   : > { %p516_p8 = scmp.lt.s32.totalorder %s3203_s19, 3 }
  0x15   : > { %p517_p9 = pnand %p2835_p7, %p516_p8 }
  0x16   : > { %s3790_s27 = sld [smem:[#allocation10_spill]] (!%p517_p9)  ;;  %p568_p10 = scmp.lt.s32.totalorder (!%p517_p9), %s3334_s14, 1 }
  0x17   : > { %520 = sbr.rel (%p517_p9) target bundleno = 2121 (0x849), region = 92  ;;  %s3791_s28 = sld [smem:[#allocation9_spill]] (!%p517_p9) }
  0x18   : > { %s3792_s0 = sld [smem:[#allocation11_spill]] (!%p517_p9)  ;;  %s2896_s25 = sshll.u32 (!%p517_p9), %s3334_s14, 4 }
  0x19   : > { %s3794_s3 = sld [smem:[#allocation12_spill]] (!%p517_p9) }
  0x1a   : > { %s3795_s5 = sld [smem:[#allocation14_spill]] (!%p517_p9) }
  0x1b   : > { %s3796_s4 = sld [smem:[#allocation13_spill]] (!%p517_p9) }
  0x1c   : > { %v661_v1 = vld [vmem:[%s3790_s27 + $0x8] sm:$0xff]  ;;  %v3205_v2 = vmov 0.0   ;;  %v660_v3 = vld [vmem:[%s3790_s27] sm:$0xff]  ;;  %vm3206_vm0 = vmmov 0   ;;  %s569_s21 = scalar_select %p568_p10, %s3334_s14, 1  ;;  %vm662_vm1 = vcmask 130048  }
  0x1d   : > { %2954 = vmatprep.subr.mxu1 %v3205_v2  ;;  %2958 = vmatprep.mubr.msk.f32.mxu1 %vm3206_vm0, %v3205_v2  ;;  %vm585_vm2 = vcmask 1043456   ;;  %vm581_vm3 = vcmask 31744   ;;  %v3207_v7 = vmov 0   ;;  %v1361_v9 = vld [vmem:[%s3766_s12] sm:$0xff]  ;;  %vm822_vm4 = vcmask 64512   ;;  %v1211_v33 = vld [vmem:[%s3762_s8 + $0x8] sm:$0xff] }
  0x1e   : > { %2955 = vmatpush3.msra.mxu1 %v661_v1  ;;  %2949 = vmatprep.subr.mxu0 %v3205_v2  ;;  %s2836_s22 = sshll.u32 %s569_s21, 2  ;;  %s3793_s20 = smov %s3792_s0  ;;  %v2837_v4 = vld [vmem:[%s3792_s0 + $0x8] sm:$0xff]  ;;  %v1046_v22 = vld [vmem:[%s3760_s6] sm:$0xff] }
  0x1f   : > { %2956 = vmatprep.subr.mxu1 %v3205_v2  ;;  %2951 = vmatprep.mubr.msk.f32.mxu0 %vm3206_vm0, %v3205_v2  ;;  %s571_s1 = scalar_lea.vmem %s3791_s28, %s2836_s22  ;;  %v573_v6 = vld [vmem:[%s3794_s3] sm:$0xff]  ;;  %v2849_v45 = vld [vmem:[%s3763_s9 + $0x8] sm:$0xff]  ;;  %s566_s22 = sand.u32 1, %s3195_s30  }
  0x20   : > { %2957 = vmatpush3.msra.mxu1 %v660_v3  ;;  %v572_v5 = vld [vmem:[%s571_s1] sm:$0xf]  ;;  %3129 = vset.pattern.permute.xlu0 %v3207_v7  ;;  %v2853_v57 = vld [vmem:[%s3765_s11 + $0x8] sm:$0xff]  ;;  %s567_s26 = scalar_lea.vmem [#allocation3], %s566_s22  ;;  %s2775_s0 = scalar_lea.hbm %s3772_s18, %s2896_s25 }
  0x21   : > { %2966 = vmatprep.subr.mxu1 %v3205_v2  ;;  %2959 = vmatmul.mubr.msk.f32.vlgmr.msra.gmra.mxu1 %vm662_vm1, %v572_v5  ;;  %v814_v8 = vld [vmem:[%s3795_s5] sm:$0xff]  ;;  %v2843_v21 = vld [vmem:[%s3796_s4 + $0x8] sm:$0xff]  ;;  %s2777_s28 = sshll.u32 %s567_s26, 4  ;;  %s2765_s27 = scalar_lea.sflag [#allocation4], %s566_s22  ;;  %s2778_s28 = int_to_ptr.vmem [resolvable:$true] %s2777_s28 }
  0x22   : > { %2950 = vmatpush3.msk.msra.mxu0 %vm585_vm2, %v572_v5  ;;  %2968 = vmatprep.mubr.msk.f32.mxu1 %vm3206_vm0, %v3205_v2  ;;  %v735_v10 = vld [vmem:[%s3793_s20] sm:$0xff]  ;;  %s3143_s21 = scalar_lea.vmem %s2778_s28, 16  ;;  %s3214_s14 = smov [#allocation3]  }
  0x23   : > { %2952 = vmatmul.mubr.msk.f32.vlgmr.msra.gmra.mxu0 %vm581_vm3, %v2837_v4  ;;  %2961 = vmatprep.subr.mxu0 %v3205_v2  ;;  %v1047_v23 = vld [vmem:[%s3761_s7] sm:$0xff]  ;;  %p3144_p11 = scmp.ne.s32.totalorder %s2778_s28, %s3143_s21  ;;  %s3147_s3 = sshll.u32 %s3214_s14, 4  ;;  %s3148_s3 = int_to_ptr.vmem [resolvable:$false] %s3147_s3 }
  0x24   : > { %2963 = vmatprep.mubr.msk.f32.mxu0 %vm3206_vm0, %v3205_v2  ;;  %3130 = vset.pattern.permute.xlu1 %v3207_v7  ;;  %v1128_v24 = vld [vmem:[%s3764_s10] sm:$0xff]  ;;  %p3150_p0 = scmp.lt.s32.totalorder %s2778_s28, %s3148_s3 }
  0x25   : > { %576 = vperm.xlu0 %3129, %v573_v6   ;;  %1050 = vperm.xlu1 %3130, %v1047_v23   ;;  %v1595_v25 = vld [vmem:[#allocation2] sm:$0x1]  ;;  %p3145_p12 = pnand %p3144_p11, %p3351_p5 }
  0x26   : > { %v970_v26 = vld [vmem:[%s3796_s4] sm:$0xff]  ;;  %s3149_s4 = scalar_lea.vmem %s3148_s3, 32 }
  0x27   : > { %v1210_v34 = vld [vmem:[%s3762_s8] sm:$0xff]  ;;  %p3146_p13 = pneg %p3145_p12  ;;  %p3151_p1 = scmp.lt.s32.totalorder %s3149_s4, %s3143_s21 }
  0x28   : > { %v1285_v46 = vld [vmem:[%s3763_s9] sm:$0xff] }
  0x29   : > { %817 = vperm.xlu0 %3129, %v814_v8   ;;  %1131 = vperm.xlu1 %3130, %v1128_v24   ;;  %v1516_v58 = vld [vmem:[%s3765_s11] sm:$0xff]  ;;  %p3152_p2 = por %p3151_p1, %p3150_p0 }
  0x2a   : > { %v1594_v8 = vld [vmem:[%s3767_s13] sm:$0x1] }
  0x2b   : > { %p3153_p3 = pnand %p3152_p2, %p3146_p13 }
  0x2d   : > { %1364 = vperm.xlu0 %3129, %v1361_v9   ;;  %1598 = vperm.xlu1 %3130, %v1595_v25   ;;  %v1783_v9 = vld [vmem:[%s3769_s15 + $0x8] sm:$0xff] }
  0xa0   : > { %v577_v15 = vpop.permute.xlu0 %576  ;;  %v1051_v37 = vpop.permute.xlu1 %1050 }
  0xa4   : > { %v818_v35 = vpop.permute.xlu0 %817  ;;  %v1132_v51 = vpop.permute.xlu1 %1131 }
  0xa8   : > { %v1365_v63 = vpop.permute.xlu0 %1364 }
  0xe1   : > { %v731_v11 = vpop.f32.mrf.mxu1 }
  0xe2   : > { %2962 = vmatpush3.msk.msra.mxu0 %vm585_vm2, %v731_v11  ;;  %v1782_v11 = vld [vmem:[%s3769_s15] sm:$0xff] }
  0xe3   : > { %v655_v12 = vpop.f32.mrf.mxu0  ;;  %v2960_v13 = vpop.f32.mrf.mxu1  ;;  %2964 = vmatmul.mubr.msk.f32.vlgmr.msra.gmra.mxu0 %vm581_vm3, %v735_v10  ;;  %2971 = vmatprep.subr.mxu0 %v3205_v2  ;;  %v1963_v10 = vld [vmem:[%s3770_s16 + $0x8] sm:$0xff] }
  0xe4   : > { %2972 = vmatpush3.msra.mxu0 %v661_v1  ;;  %2975 = vmatprep.mubr.msk.f32.mxu0 %vm3206_vm0, %v3205_v2  ;;  %v659_v16 = vadd.f32 %v655_v12, %v577_v15  ;;  %v1962_v12 = vld [vmem:[%s3770_s16] sm:$0xff]  ;;  %v1601_v13 = vlaneseq }
  0xe5   : > { %v2953_v14 = vpop.f32.mrf.mxu0  ;;  %2973 = vmatprep.subr.mxu0 %v3205_v2 }
  0xe6   : > { %2974 = vmatpush3.msra.mxu0 %v660_v3  ;;  %v1602_v14 = vshrl.u32 %v1601_v13, 7 }
  0xe7   : > { %2983 = vmatprep.subr.mxu0 %v3205_v2 }
  0xe8   : > { %v1603_v15 = vsub.s32 0, %v1602_v14 }
 0x1a3   : > { %v808_v17 = vpop.f32.mrf.mxu0 }
 0x1a4   : > { %v812_v18 = vadd.f32 %v808_v17, %v659_v16  ;;  %v1599_v16 = vpop.permute.xlu1 %1598 }
 0x1a5   : > { %v2965_v19 = vpop.f32.mrf.mxu0  ;;  %v1604_v17 = vrot.slane %v1599_v16, %v1603_v15 }
 0x1a6   : > { %v813_v20 = vmax.f32 %v812_v18, 0.0 }
 0x1a8   : > { %2967 = vmatpush3.msra.mxu1 %v813_v20  ;;  %2976 = vmatmul.mubr.msk.f32.vlgmr.msra.gmra.mxu0 %vm662_vm1, %v813_v20 }
 0x1a9   : > { %2969 = vmatmul.mubr.msk.f32.vlgmr.msra.gmra.mxu1 %vm822_vm4, %v2843_v21  ;;  %2978 = vmatprep.subr.mxu1 %v3205_v2 }
 0x1aa   : > { %2980 = vmatprep.mubr.msk.f32.mxu1 %vm3206_vm0, %v3205_v2  ;;  %2984 = vmatpush3.msk.msra.mxu0 %vm585_vm2, %v572_v5 }
 0x1ab   : > { %2985 = vmatprep.mubr.msk.f32.mxu0 %vm3206_vm0, %v3205_v2  ;;  %2993 = vmatprep.subr.mxu0 %v3205_v2 }
 0x1ac   : > { %2986 = vmatmul.mubr.msk.f32.vlgmr.msra.gmra.mxu0 %vm581_vm3, %v1046_v22 }
 0x1ad   : > { %2997 = vmatprep.mubr.msk.f32.mxu0 %vm3206_vm0, %v3205_v2  ;;  %2994 = vmatpush3.msra.mxu0 %v1211_v33 }
 0x1ae   : > { %2995 = vmatprep.subr.mxu0 %v3205_v2 }
 0x1af   : > { %2996 = vmatpush3.msra.mxu0 %v1210_v34 }
 0x1b0   : > { %3005 = vmatprep.subr.mxu0 %v3205_v2 }
 0x268   : > { %v966_v27 = vpop.f32.mrf.mxu0 }
 0x269   : > { %v892_v28 = vpop.f32.mrf.mxu1  ;;  %2979 = vmatpush3.msra.mxu1 %v966_v27 }
 0x26a   : > { %v2977_v29 = vpop.f32.mrf.mxu0  ;;  %2981 = vmatmul.mubr.msk.f32.vlgmr.msra.gmra.mxu1 %vm822_vm4, %v970_v26  ;;  %2988 = vmatprep.subr.mxu1 %v3205_v2  ;;  %v896_v36 = vadd.f32 %v892_v28, %v818_v35 }
 0x26b   : > { %v2970_v30 = vpop.f32.mrf.mxu1  ;;  %2990 = vmatprep.mubr.msk.f32.mxu1 %vm3206_vm0, %v3205_v2 }
 0x26c   : > { %v1122_v31 = vpop.f32.mrf.mxu0 }
 0x26d   : > { %v1123_v40 = vadd.f32 %v1122_v31, %v1051_v37 }
 0x26e   : > { %v2987_v32 = vpop.f32.mrf.mxu0 }
 0x32a   : > { %v1040_v38 = vpop.f32.mrf.mxu1 }
 0x32b   : > { %v1044_v39 = vadd.f32 %v1040_v38, %v896_v36 }
 0x32c   : > { %v2982_v41 = vpop.f32.mrf.mxu1 }
 0x32d   : > { %v1045_v42 = vmax.f32 %v1044_v39, 0.0 }
 0x32f   : > { %v1126_v43 = vadd.f32 %v1123_v40, %v1045_v42 }
 0x331   : > { %v1127_v44 = vmax.f32 %v1126_v43, 0.0 }
 0x333   : > { %2989 = vmatpush3.msra.mxu1 %v1127_v44  ;;  %2998 = vmatmul.mubr.msk.f32.vlgmr.msra.gmra.mxu0 %vm662_vm1, %v1127_v44 }
 0x334   : > { %2991 = vmatmul.mubr.msk.f32.vlgmr.msra.gmra.mxu1 %vm822_vm4, %v2849_v45  ;;  %3000 = vmatprep.subr.mxu1 %v3205_v2 }
 0x335   : > { %3002 = vmatprep.mubr.msk.f32.mxu1 %vm3206_vm0, %v3205_v2  ;;  %3007 = vmatprep.mubr.msk.f32.mxu0 %vm3206_vm0, %v3205_v2 }
 0x3f3   : > { %v1281_v47 = vpop.f32.mrf.mxu0 }
 0x3f4   : > { %v1205_v48 = vpop.f32.mrf.mxu1  ;;  %3001 = vmatpush3.msra.mxu1 %v1281_v47 }
 0x3f5   : > { %v2999_v49 = vpop.f32.mrf.mxu0  ;;  %3003 = vmatmul.mubr.msk.f32.vlgmr.msra.gmra.mxu1 %vm822_vm4, %v1285_v46  ;;  %3010 = vmatprep.subr.mxu1 %v3205_v2  ;;  %v1209_v52 = vadd.f32 %v1205_v48, %v1132_v51  ;;  %v3208_v46 = vmov 683565275   ;;  %v3209_v48 = vmov 2475754826  }
 0x3f6   : > { %v2992_v50 = vpop.f32.mrf.mxu1  ;;  %3011 = vmatpush3.msra.mxu1 %v1211_v33  ;;  %3014 = vmatprep.mubr.msk.f32.mxu1 %vm3206_vm0, %v3205_v2 }
 0x3f7   : > { %3012 = vmatprep.subr.mxu1 %v3205_v2  ;;  %v3210_v50 = vmov 2131351028  }
 0x3f8   : > { %3013 = vmatpush3.msra.mxu1 %v1210_v34 }
 0x3f9   : > { %3022 = vmatprep.subr.mxu1 %v3205_v2 }
 0x4b5   : > { %v1355_v53 = vpop.f32.mrf.mxu1 }
 0x4b6   : > { %v1359_v54 = vadd.f32 %v1355_v53, %v1209_v52  ;;  %v3211_v52 = vmov 2102212464  }
 0x4b7   : > { %v3004_v55 = vpop.f32.mrf.mxu1 }
 0x4b8   : > { %v1360_v56 = vmax.f32 %v1359_v54, 0.0  ;;  %v3212_v54 = vmov 920167782  }
 0x4ba   : > { %3006 = vmatpush3.msra.mxu0 %v1360_v56  ;;  %3015 = vmatmul.mubr.msk.f32.vlgmr.msra.gmra.mxu1 %vm662_vm1, %v1360_v56 }
 0x4bb   : > { %3008 = vmatmul.mubr.msk.f32.vlgmr.msra.gmra.mxu0 %vm822_vm4, %v2853_v57  ;;  %3017 = vmatprep.subr.mxu0 %v3205_v2 }
 0x4bc   : > { %3019 = vmatprep.mubr.msk.f32.mxu0 %vm3206_vm0, %v3205_v2  ;;  %3024 = vmatprep.mubr.msk.f32.mxu1 %vm3206_vm0, %v3205_v2 }
 0x57a   : > { %v1512_v59 = vpop.f32.mrf.mxu1 }
 0x57b   : > { %v1438_v60 = vpop.f32.mrf.mxu0  ;;  %3018 = vmatpush3.msra.mxu0 %v1512_v59 }
 0x57c   : > { %v3016_v61 = vpop.f32.mrf.mxu1  ;;  %3020 = vmatmul.mubr.msk.f32.vlgmr.msra.gmra.mxu0 %vm822_vm4, %v1516_v58  ;;  %3027 = vmatprep.subr.mxu0 %v3205_v2  ;;  %v1442_v0 = vadd.f32 %v1438_v60, %v1365_v63 }
 0x57d   : > { %v3009_v62 = vpop.f32.mrf.mxu0  ;;  %3031 = vmatprep.mubr.msk.f32.mxu0 %vm3206_vm0, %v3205_v2  ;;  %3028 = vmatpush3.msra.mxu0 %v1783_v9  ;;  %v3213_v61 = vmov 1326507024  }
 0x57e   : > { %3029 = vmatprep.subr.mxu0 %v3205_v2 }
 0x57f   : > { %3030 = vmatpush3.msra.mxu0 %v1782_v11 }
 0x580   : > { %3041 = vmatprep.subr.mxu0 %v3205_v2 }
 0x63c   : > { %v1586_v1 = vpop.f32.mrf.mxu0 }
 0x63d   : > { %v1590_v3 = vadd.f32 %v1586_v1, %v1442_v0 }
 0x63e   : > { %v3021_v4 = vpop.f32.mrf.mxu0 }
 0x63f   : > { %v1591_v5 = vmax.f32 %v1590_v3, 0.0 }
 0x641   : > { %v1592_v6 = vadd.f32 %v1591_v5, %v1127_v44 }
 0x643   : > { %v1593_v7 = vmax.f32 %v1592_v6, 0.0 }
 0x645   : > { %3023 = vmatpush3.msra.mxu1 %v1593_v7 }
 0x646   : > { %3025 = vmatmul.mubr.msk.f32.vlgmr.msra.gmra.mxu1 %vm822_vm4, %v1594_v8  ;;  %3034 = vmatprep.subr.mxu1 %v3205_v2 }
 0x647   : > { %3038 = vmatprep.mubr.msk.f32.mxu1 %vm3206_vm0, %v3205_v2  ;;  %3035 = vmatpush3.msra.mxu1 %v1963_v10 }
 0x648   : > { %3036 = vmatprep.subr.mxu1 %v3205_v2 }
 0x649   : > { %3037 = vmatpush3.msra.mxu1 %v1962_v12 }
 0x64a   : > { %3048 = vmatprep.subr.mxu1 %v3205_v2 }
 0x706   : > { %v1674_v18 = vpop.f32.mrf.mxu1 }
 0x707   : > { %v3508_v19 = vadd.f32 %v1674_v18, %v1604_v17 }
 0x708   : > { %v3026_v20 = vpop.f32.mrf.mxu1 }
 0x709   : > { %v1682_v21 = vand.u32 2139095040, %v3508_v19  ;;  %v1679_v22 = vand.u32 2147483647, %v3508_v19  ;;  %v3513_v23 = vmul.f32 2.0, %v3508_v19  ;;  %v3516_v24 = vmul.f32 3.0, %v3508_v19 }
 0x70b   : > { %v1683_v25 = vshrl.u32 %v1682_v21, 23  ;;  %v1686_v26 = vand.u32 8388607, %v1679_v22  ;;  %v2039_v27 = vand.u32 2147483647, %v3513_v23  ;;  %v2042_v28 = vand.u32 2139095040, %v3513_v23 }
 0x70c   : > { %v2404_v32 = vand.u32 2139095040, %v3516_v24 }
 0x70d   : > { %v2858_v29 = vadd.s32 4294967169, %v1683_v25  ;;  %v2043_v30 = vshrl.u32 %v2042_v28, 23  ;;  %v2046_v31 = vand.u32 8388607, %v2039_v27  ;;  %v1687_v34 = vor.u32 8388608, %v1686_v26 }
 0x70e   : > { %v2405_v37 = vshrl.u32 %v2404_v32, 23 }
 0x70f   : > { %v1689_v33 = vadd.s32 1, %v2858_v29  ;;  %v2868_v35 = vadd.s32 4294967169, %v2043_v30  ;;  %v2047_v36 = vor.u32 8388608, %v2046_v31  ;;  %v3525_v42 = vshll.u32 %v1687_v34, 8 }
 0x710   : > { %v2882_v44 = vadd.s32 4294967169, %v2405_v37 }
 0x711   : > { %vm1690_vm5 = vcmp.gt.s32.totalorder %v1689_v33, 0  ;;  %v2049_v39 = vadd.s32 1, %v2868_v35  ;;  %v3527_v43 = vshll.u32 %v2047_v36, 8 }
 0x712   : > { %v1691_v38 = vsel %vm1690_vm5, %v1689_v33, 0  ;;  %v2411_v18 = vadd.s32 1, %v2882_v44 }
 0x713   : > { %v1692_v40 = vshrl.u32 %v1691_v38, 5  ;;  %v1693_v41 = vand.u32 31, %v1691_v38  ;;  %vm2050_vm6 = vcmp.gt.s32.totalorder %v2049_v39, 0 }
 0x714   : > { %v2051_v3 = vsel %vm2050_vm6, %v2049_v39, 0  ;;  %vm2412_vm2 = vcmp.gt.s32.totalorder %v2411_v18, 0 }
 0x715   : > { %v1694_v45 = vsub.s32 32, %v1693_v41  ;;  %v1696_v47 = vshll.u32 %v3208_v46, %v1693_v41  ;;  %v1699_v49 = vshll.u32 %v3209_v48, %v1693_v41  ;;  %v1702_v51 = vshll.u32 %v3210_v50, %v1693_v41 }
 0x716   : > { %v1705_v53 = vshll.u32 %v3211_v52, %v1693_v41  ;;  %v1708_v55 = vshll.u32 %v3212_v54, %v1693_v41  ;;  %vm1711_vm7 = vcmp.lt.s32.totalorder %v1692_v40, 1  ;;  %vm1712_vm8 = vcmp.lt.s32.totalorder %v1692_v40, 2 }
 0x717   : > { %v1697_v56 = vshrl.u32 %v3209_v48, %v1694_v45  ;;  %v1700_v57 = vshrl.u32 %v3210_v50, %v1694_v45  ;;  %v1703_v58 = vshrl.u32 %v3211_v52, %v1694_v45  ;;  %v1695_v59 = vshrl.u32 %v3208_v46, %v1694_v45 }
 0x718   : > { %v1706_v60 = vshrl.u32 %v3212_v54, %v1694_v45  ;;  %v1709_v62 = vshrl.u32 %v3213_v61, %v1694_v45  ;;  %vm1713_vm9 = vcmp.lt.s32.totalorder %v1692_v40, 3  ;;  %vm1714_vm10 = vcmp.lt.s32.totalorder %v1692_v40, 4 }
 0x719   : > { %v1698_v63 = vor.u32 %v1697_v56, %v1696_v47  ;;  %v1701_v0 = vor.u32 %v1700_v57, %v1699_v49  ;;  %v1704_v1 = vor.u32 %v1703_v58, %v1702_v51  ;;  %v2053_v6 = vand.u32 31, %v2051_v3 }
 0x71a   : > { %v1707_v4 = vor.u32 %v1706_v60, %v1705_v53  ;;  %v1710_v5 = vor.u32 %v1709_v62, %v1708_v55  ;;  %v2052_v25 = vshrl.u32 %v2051_v3, 5 }
 0x71b   : > { %v1715_v7 = vsel %vm1711_vm7, %v1695_v59, %v1698_v63  ;;  %v1716_v8 = vsel %vm1714_vm10, %v1704_v1, 2102212464  ;;  %v1719_v9 = vsel %vm1711_vm7, %v1698_v63, %v1701_v0  ;;  %v1723_v10 = vsel %vm1711_vm7, %v1701_v0, %v1704_v1 }
 0x71c   : > { %v1717_v11 = vsel %vm1713_vm9, %v1701_v0, %v1716_v8  ;;  %v1720_v12 = vsel %vm1714_vm10, %v1707_v4, 920167782  ;;  %v1724_v13 = vsel %vm1714_vm10, %v1710_v5, 1326507024  ;;  %v2054_v14 = vsub.s32 32, %v2053_v6 }
 0x71d   : > { %v1718_v15 = vsel %vm1712_vm8, %v1715_v7, %v1717_v11  ;;  %v1721_v16 = vsel %vm1713_vm9, %v1704_v1, %v1720_v12  ;;  %v1725_v17 = vsel %vm1713_vm9, %v1707_v4, %v1724_v13  ;;  %v2056_v26 = vshll.u32 %v3208_v46, %v2053_v6 }
 0x71e   : > { %v1722_v20 = vsel %vm1712_vm8, %v1719_v9, %v1721_v16  ;;  %v1726_v21 = vsel %vm1712_vm8, %v1723_v10, %v1725_v17  ;;  %v1734_v32 = vmul.u32 %v3525_v42, %v1718_v15  ;;  %v2057_v33 = vshrl.u32 %v3209_v48, %v2054_v14 }
 0x71f   : > { %v3552_v28 = vmul.u32.u64.low %v3525_v42, %v1726_v21  ;;  %v3553_v29 = vmul.u32.u64.high %v3525_v42, %v1726_v21, %v3552_v28  ;;  %v3556_v30 = vmul.u32.u64.low %v3525_v42, %v1722_v20  ;;  %v3557_v31 = vmul.u32.u64.high %v3525_v42, %v1722_v20, %v3556_v30 }
 0x720   : > { %v2059_v34 = vshll.u32 %v3209_v48, %v2053_v6  ;;  %v2060_v35 = vshrl.u32 %v3210_v50, %v2054_v14  ;;  %v2062_v36 = vshll.u32 %v3210_v50, %v2053_v6  ;;  %v2063_v37 = vshrl.u32 %v3211_v52, %v2054_v14 }
 0x721   : > { %v2065_v38 = vshll.u32 %v3211_v52, %v2053_v6  ;;  %v2066_v39 = vshrl.u32 %v3212_v54, %v2054_v14  ;;  %v2058_v40 = vor.u32 %v2057_v33, %v2056_v26  ;;  %v2068_v44 = vshll.u32 %v3212_v54, %v2053_v6 }
 0x722   : > { %v2061_v41 = vor.u32 %v2060_v35, %v2059_v34  ;;  %v2069_v42 = vshrl.u32 %v3213_v61, %v2054_v14  ;;  %vm1736_vm11 = vc.u32 %v3553_v29, %v3556_v30  ;;  %v1737_v45 = vadd.s32 1, %v3557_v31 }
 0x723   : > { %v2055_v47 = vshrl.u32 %v3208_v46, %v2054_v14  ;;  %v2064_v49 = vor.u32 %v2063_v37, %v2062_v36  ;;  %v2067_v51 = vor.u32 %v2066_v39, %v2065_v38  ;;  %vm2071_vm12 = vcmp.lt.s32.totalorder %v2052_v25, 1 }
 0x724   : > { %v2070_v53 = vor.u32 %v2069_v42, %v2068_v44  ;;  %vm2072_vm13 = vcmp.lt.s32.totalorder %v2052_v25, 2  ;;  %v1738_v55 = vsel %vm1736_vm11, %v1737_v45, %v3557_v31  ;;  %vm2073_vm14 = vcmp.lt.s32.totalorder %v2052_v25, 3 }
 0x725   : > { %vm2074_vm15 = vcmp.lt.s32.totalorder %v2052_v25, 4  ;;  %v2079_v56 = vsel %vm2071_vm12, %v2058_v40, %v2061_v41  ;;  %v1739_v57 = vadd.s32 %v1738_v55, %v1734_v32  ;;  %v2083_v60 = vsel %vm2071_vm12, %v2061_v41, %v2064_v49 }
 0x726   : > { %v2076_v58 = vsel %vm2074_vm15, %v2064_v49, 2102212464  ;;  %v2080_v59 = vsel %vm2074_vm15, %v2067_v51, 920167782  ;;  %v2075_v62 = vsel %vm2071_vm12, %v2055_v47, %v2058_v40  ;;  %v2084_v0 = vsel %vm2074_vm15, %v2070_v53, 1326507024 }
 0x727   : > { %v2081_v63 = vsel %vm2073_vm14, %v2064_v49, %v2080_v59  ;;  %v1740_v1 = vadd.s32 536870912, %v1739_v57  ;;  %v2077_v3 = vsel %vm2073_vm14, %v2061_v41, %v2076_v58  ;;  %v2085_v5 = vsel %vm2073_vm14, %v2067_v51, %v2084_v0 }
 0x728   : > { %v2082_v4 = vsel %vm2072_vm13, %v2079_v56, %v2081_v63  ;;  %v2086_v6 = vsel %vm2072_vm13, %v2083_v60, %v2085_v5  ;;  %v2413_v12 = vsel %vm2412_vm2, %v2411_v18, 0  ;;  %v2078_v13 = vsel %vm2072_vm13, %v2075_v62, %v2077_v3 }
 0x729   : > { %v3578_v7 = vmul.u32.u64.low %v3527_v43, %v2082_v4  ;;  %v3579_v8 = vmul.u32.u64.high %v3527_v43, %v2082_v4, %v3578_v7  ;;  %v3582_v9 = vshrl.u32 %v1740_v1, 30  ;;  %v2415_v15 = vand.u32 31, %v2413_v12 }
 0x72a   : > { %v3585_v10 = vmul.u32.u64.low %v3527_v43, %v2086_v6  ;;  %v3586_v11 = vmul.u32.u64.high %v3527_v43, %v2086_v6, %v3585_v10  ;;  %v2401_v17 = vand.u32 2147483647, %v3516_v24  ;;  %v2094_v21 = vmul.u32 %v3527_v43, %v2078_v13 }
 0x72b   : > { %v1742_v14 = vshll.u32 %v3582_v9, 30  ;;  %v2097_v16 = vadd.s32 1, %v3579_v8  ;;  %v2416_v18 = vsub.s32 32, %v2415_v15  ;;  %v1735_v36 = vadd.s32 %v3556_v30, %v3553_v29 }
 0x72c   : > { %vm2096_vm3 = vc.u32 %v3586_v11, %v3578_v7  ;;  %v2408_v25 = vand.u32 8388607, %v2401_v17  ;;  %v2418_v40 = vshll.u32 %v3208_v46, %v2415_v15  ;;  %v2414_v45 = vshrl.u32 %v2413_v12, 5 }
 0x72d   : > { %v1743_v20 = vsub.s32 %v1739_v57, %v1742_v14  ;;  %v2098_v26 = vsel %vm2096_vm3, %v2097_v16, %v3579_v8  ;;  %v2419_v35 = vshrl.u32 %v3209_v48, %v2416_v18  ;;  %v2425_v38 = vshrl.u32 %v3211_v52, %v2416_v18 }
 0x72e   : > { %v2099_v31 = vadd.s32 %v2098_v26, %v2094_v21  ;;  %v2409_v37 = vor.u32 8388608, %v2408_v25  ;;  %v2422_v41 = vshrl.u32 %v3210_v50, %v2416_v18  ;;  %v2428_v44 = vshrl.u32 %v3212_v54, %v2416_v18 }
 0x72f   : > { %v1745_v28 = vsub.s32 0, %v1743_v20  ;;  %v2424_v47 = vshll.u32 %v3210_v50, %v2415_v15  ;;  %v2431_v49 = vshrl.u32 %v3213_v61, %v2416_v18  ;;  %v2420_v29 = vor.u32 %v2419_v35, %v2418_v40 }
 0x730   : > { %v2100_v33 = vadd.s32 536870912, %v2099_v31  ;;  %v2421_v30 = vshll.u32 %v3209_v48, %v2415_v15  ;;  %v2427_v51 = vshll.u32 %v3211_v52, %v2415_v15  ;;  %v2430_v57 = vshll.u32 %v3212_v54, %v2415_v15 }
 0x731   : > { %v2859_v32 = vmin.u32 %v1745_v28, %v1743_v20  ;;  %v2426_v56 = vor.u32 %v2425_v38, %v2424_v47  ;;  %v2417_v50 = vshrl.u32 %v3208_v46, %v2416_v18  ;;  %v2449_v61 = vshll.u32 %v2409_v37, 8 }
 0x732   : > { %v3601_v43 = vshrl.u32 %v2100_v33, 30  ;;  %v2423_v60 = vor.u32 %v2422_v41, %v2421_v30  ;;  %v2429_v62 = vor.u32 %v2428_v44, %v2427_v51  ;;  %v2432_v0 = vor.u32 %v2431_v49, %v2430_v57 }
 0x733   : > { %v1747_v34 = vclz %v2859_v32  ;;  %vm2436_vm5 = vcmp.lt.s32.totalorder %v2414_v45, 4  ;;  %vm2433_vm6 = vcmp.lt.s32.totalorder %v2414_v45, 1  ;;  %vm2435_vm7 = vcmp.lt.s32.totalorder %v2414_v45, 3 }
 0x734   : > { %v2102_v42 = vshll.u32 %v3601_v43, 30  ;;  %v2438_v52 = vsel %vm2436_vm5, %v2426_v56, 2102212464  ;;  %v2441_v54 = vsel %vm2433_vm6, %v2420_v29, %v2423_v60  ;;  %v2442_v8 = vsel %vm2436_vm5, %v2429_v62, 920167782 }
 0x735   : > { %v2860_v39 = vadd.s32 4294967294, %v1747_v34  ;;  %v2443_v12 = vsel %vm2435_vm7, %v2426_v56, %v2442_v8  ;;  %v2445_v13 = vsel %vm2433_vm6, %v2423_v60, %v2426_v56  ;;  %v2446_v14 = vsel %vm2436_vm5, %v2432_v0, 1326507024 }
 0x736   : > { %v2103_v55 = vsub.s32 %v2099_v31, %v2102_v42  ;;  %vm2434_vm8 = vcmp.lt.s32.totalorder %v2414_v45, 2  ;;  %v2437_v15 = vsel %vm2433_vm6, %v2417_v50, %v2420_v29  ;;  %v2439_v16 = vsel %vm2435_vm7, %v2423_v60, %v2438_v52 }
 0x737   : > { %vm2861_vm4 = vcmp.lt.s32.totalorder %v2860_v39, 0  ;;  %v2444_v26 = vsel %vm2434_vm8, %v2441_v54, %v2443_v12  ;;  %v2447_v28 = vsel %vm2435_vm7, %v2429_v62, %v2446_v14  ;;  %v2440_v33 = vsel %vm2434_vm8, %v2437_v15, %v2439_v16 }
 0x738   : > { %v1750_v53 = vsel %vm2861_vm4, 0, %v2860_v39  ;;  %v2105_v63 = vsub.s32 0, %v2103_v55  ;;  %v2448_v18 = vsel %vm2434_vm8, %v2445_v13, %v2447_v28  ;;  %vm1681_vm10 = vcmp.lt.s32.totalorder %v3508_v19, 0 }
 0x739   : > { %v1751_v58 = vsub.s32 32, %v1750_v53  ;;  %v1755_v59 = vsub.s32 4294967266, %v1750_v53  ;;  %v1752_v1 = vshll.u32 %v1743_v20, %v1750_v53  ;;  %v2095_v38 = vadd.s32 %v3578_v7, %v3586_v11 }
 0x73a   : > { %v2869_v48 = vmin.u32 %v2105_v63, %v2103_v55  ;;  %v3617_v25 = vmul.u32.u64.low %v2449_v61, %v2444_v26  ;;  %v3618_v32 = vmul.u32.u64.high %v2449_v61, %v2444_v26, %v3617_v25  ;;  %v1765_v44 = vsub.s32 4, %v3582_v9 }
 0x73b   : > { %v1753_v3 = vshrl.u32 %v1735_v36, %v1751_v58  ;;  %v1756_v4 = vadd.s32 127, %v1755_v59  ;;  %v3621_v34 = vmul.u32.u64.low %v2449_v61, %v2448_v18  ;;  %v3622_v35 = vmul.u32.u64.high %v2449_v61, %v2448_v18, %v3621_v34  ;;  %v2880_v18 = vld [vmem:[%s3770_s16 + $0x18] sm:$0xff] }
 0x73c   : > { %v2107_v10 = vclz %v2869_v48  ;;  %v2456_v42 = vmul.u32 %v2449_v61, %v2440_v33  ;;  %v2459_v45 = vadd.s32 1, %v3618_v32  ;;  %vm1680_vm12 = vcmp.le.f32.partialorder %v1679_v22, 0.7853982 }
 0x73d   : > { %v1754_v5 = vor.u32 %v1753_v3, %v1752_v1  ;;  %v1757_v6 = vshll.u32 %v1756_v4, 23  ;;  %vm2458_vm11 = vc.u32 %v3622_v35, %v3617_v25  ;;  %vm2041_vm13 = vcmp.lt.s32.totalorder %v3513_v23, 0 }
 0x73e   : > { %v2870_v21 = vadd.s32 4294967294, %v2107_v10  ;;  %v2460_v11 = vsel %vm2458_vm11, %v2459_v45, %v3618_v32  ;;  %v2125_v3 = vsub.s32 4, %v3601_v43  ;;  %vm3647_vm14 = vcmp.le.f32.partialorder %v2039_v27, 0.7853982 }
 0x73f   : > { %v1758_v46 = vor.u32 4788187, %v1757_v6  ;;  %v1761_v20 = vcvt.s32.f32 %v1754_v5  ;;  %v2461_v56 = vadd.s32 %v2460_v11, %v2456_v42  ;;  %vm1771_vm15 = vweird.f32 %v3508_v19 }
 0x740   : > { %vm2871_vm9 = vcmp.lt.s32.totalorder %v2870_v21, 0  ;;  %v2126_v8 = vsel %vm2041_vm13, %v2125_v3, %v3601_v43 }
 0x741   : > { %v1759_v31 = vand.u32 2147483647, %v1758_v46  ;;  %v2110_v37 = vsel %vm2871_vm9, 0, %v2870_v21  ;;  %v2462_v58 = vadd.s32 536870912, %v2461_v56  ;;  %v2128_v46 = vsel %vm3647_vm14, 0, %v2126_v8 }
 0x742   : > { %v2111_v39 = vsub.s32 32, %v2110_v37  ;;  %v2115_v40 = vsub.s32 4294967266, %v2110_v37  ;;  %v2112_v47 = vshll.u32 %v2103_v55, %v2110_v37  ;;  %v1766_v55 = vsel %vm1681_vm10, %v1765_v44, %v3582_v9 }
 0x743   : > { %v1762_v36 = vmul.f32 %v1761_v20, %v1759_v31  ;;  %v3640_v60 = vshrl.u32 %v2462_v58, 30  ;;  %v1768_v62 = vsel %vm1680_vm12, 0, %v1766_v55  ;;  %v2873_v31 = vld [vmem:[%s3769_s15 + $0x18] sm:$0xff]  ;;  %v2312_v32 = vadd.s32 3, %v2128_v46 }
 0x744   : > { %v2113_v49 = vshrl.u32 %v2095_v38, %v2111_v39  ;;  %v2116_v29 = vadd.s32 127, %v2115_v40  ;;  %v1951_v0 = vadd.s32 3, %v1768_v62  ;;  %v1772_v52 = vand.u32 3, %v1768_v62  ;;  %v2872_v39 = vld [vmem:[%s3769_s15 + $0x10] sm:$0xff]  ;;  %v2887_v62 = vld [vmem:[%s3769_s15 + $0x28] sm:$0xff] }
 0x745   : > { %v1763_v41 = vxor.u32 2147483648, %v1762_v36  ;;  %v2464_v50 = vshll.u32 %v3640_v60, 30  ;;  %v2457_v37 = vadd.s32 %v3617_v25, %v3622_v35  ;;  %v2313_v25 = vand.u32 3, %v2312_v32 }
 0x746   : > { %v2114_v51 = vor.u32 %v2113_v49, %v2112_v47  ;;  %v2117_v53 = vshll.u32 %v2116_v29, 23  ;;  %v1952_v6 = vand.u32 3, %v1951_v0  ;;  %vm1773_vm2 = vcmp.lt.s32.totalorder %v1772_v52, 2 }
 0x747   : > { %v1764_v7 = vsel %vm1681_vm10, %v1763_v41, %v1762_v36  ;;  %v2465_v1 = vsub.s32 %v2461_v56, %v2464_v50  ;;  %vm1777_vm3 = vcmp.eq.s32.totalorder %v1772_v52, 2  ;;  %vm1774_vm5 = vcmp.eq.s32.totalorder %v1772_v52, 0 }
 0x748   : > { %v1767_v30 = vsel %vm1680_vm12, %v3508_v19, %v1764_v7  ;;  %v2118_v57 = vor.u32 4788187, %v2117_v53  ;;  %v2121_v22 = vcvt.s32.f32 %v2114_v51  ;;  %vm1957_vm4 = vcmp.eq.s32.totalorder %v1952_v6, 2  ;;  %v2879_v19 = vld [vmem:[%s3770_s16 + $0x10] sm:$0xff] }
 0x749   : > { %3131 = vcosq.f32 %v1767_v30  ;;  %v2467_v48 = vsub.s32 0, %v2465_v1  ;;  %vm1954_vm6 = vcmp.eq.s32.totalorder %v1952_v6, 0  ;;  %vm1953_vm7 = vcmp.lt.s32.totalorder %v1952_v6, 2 }
 0x74a   : > { %3133 = vsinq.f32 %v1767_v30  ;;  %v2119_v59 = vand.u32 2147483647, %v2118_v57  ;;  %v2132_v41 = vand.u32 3, %v2128_v46  ;;  %vm2318_vm12 = vcmp.eq.s32.totalorder %v2313_v25, 2 }
 0x74b   : > { %v2883_v54 = vmin.u32 %v2467_v48, %v2465_v1  ;;  %v2487_v9 = vsub.s32 4, %v3640_v60 }
 0x74c   : > { %v2122_v63 = vmul.f32 %v2121_v22, %v2119_v59  ;;  %vm2133_vm9 = vcmp.lt.s32.totalorder %v2132_v41, 2  ;;  %vm2134_vm10 = vcmp.eq.s32.totalorder %v2132_v41, 0  ;;  %vm2137_vm11 = vcmp.eq.s32.totalorder %v2132_v41, 2 }
 0x74d   : > { %v2469_v12 = vclz %v2883_v54 }
 0x74e   : > { %v2123_v61 = vxor.u32 2147483648, %v2122_v63 }
 0x74f   : > { %v2884_v15 = vadd.s32 4294967294, %v2469_v12 }
 0x750   : > { %v2124_v4 = vsel %vm2041_vm13, %v2123_v61, %v2122_v63  ;;  %vm2314_vm13 = vcmp.lt.s32.totalorder %v2313_v25, 2  ;;  %v2894_v63 = vld [vmem:[%s3770_s16 + $0x28] sm:$0xff] }
 0x751   : > { %v2127_v5 = vsel %vm3647_vm14, %v3513_v23, %v2124_v4  ;;  %vm2885_vm8 = vcmp.lt.s32.totalorder %v2884_v15, 0  ;;  %vm2315_vm14 = vcmp.eq.s32.totalorder %v2313_v25, 0 }
 0x752   : > { %3135 = vcosq.f32 %v2127_v5  ;;  %v2472_v33 = vsel %vm2885_vm8, 0, %v2884_v15 }
 0x753   : > { %3137 = vsinq.f32 %v2127_v5  ;;  %v2473_v38 = vsub.s32 32, %v2472_v33  ;;  %v2477_v40 = vsub.s32 4294967266, %v2472_v33  ;;  %v2474_v35 = vshll.u32 %v2465_v1, %v2472_v33  ;;  %v2893_v1 = vld [vmem:[%s3770_s16 + $0x20] sm:$0xff] }
 0x755   : > { %v2475_v44 = vshrl.u32 %v2457_v37, %v2473_v38  ;;  %v2478_v42 = vadd.s32 127, %v2477_v40 }
 0x756   : > { %v3132_v10 = vpop.eup %3131 }
 0x757   : > { %v3134_v13 = vpop.eup %3133  ;;  %v1778_v27 = vxor.u32 2147483648, %v3132_v10  ;;  %v2476_v47 = vor.u32 %v2475_v44, %v2474_v35  ;;  %v2479_v49 = vshll.u32 %v2478_v42, 23 }
 0x758   : > { %v1775_v14 = vxor.u32 2147483648, %v3134_v13 }
 0x759   : > { %v1779_v16 = vsel %vm1777_vm3, %v1778_v27, %v3134_v13  ;;  %v1959_v20 = vsel %vm1957_vm4, %v1778_v27, %v3134_v13  ;;  %v2480_v30 = vor.u32 4788187, %v2479_v49  ;;  %v2483_v58 = vcvt.s32.f32 %v2476_v47 }
 0x75a   : > { %v1776_v43 = vsel %vm1774_vm5, %v3132_v10, %v1775_v14  ;;  %v1956_v21 = vsel %vm1954_vm6, %v3132_v10, %v1775_v14  ;;  %vm2402_vm3 = vcmp.le.f32.partialorder %v2401_v17, 0.7853982 }
 0x75b   : > { %v1780_v26 = vsel %vm1773_vm2, %v1776_v43, %v1779_v16  ;;  %v1960_v28 = vsel %vm1953_vm7, %v1956_v21, %v1959_v20  ;;  %v2481_v57 = vand.u32 2147483647, %v2480_v30  ;;  %vm2403_vm2 = vcmp.lt.s32.totalorder %v3516_v24, 0 }
 0x75c   : > { %v1781_v34 = vsel %vm1771_vm15, nan, %v1780_v26  ;;  %v1961_v36 = vsel %vm1771_vm15, nan, %v1960_v28  ;;  %vm2131_vm15 = vweird.f32 %v3513_v23  ;;  %v2886_v23 = vld [vmem:[%s3769_s15 + $0x20] sm:$0xff]  ;;  %v2488_v52 = vsel %vm2403_vm2, %v2487_v9, %v3640_v60 }
 0x75d   : > { %3032 = vmatmul.mubr.msk.f32.vlgmr.msra.gmra.mxu0 %vm662_vm1, %v1781_v34  ;;  %3039 = vmatmul.mubr.msk.f32.vlgmr.msra.gmra.mxu1 %vm662_vm1, %v1961_v36  ;;  %v2484_v61 = vmul.f32 %v2483_v58, %v2481_v57  ;;  %v2490_v5 = vsel %vm2402_vm3, 0, %v2488_v52 }
 0x75e   : > { %3042 = vmatpush3.msra.mxu0 %v2873_v31  ;;  %3049 = vmatpush3.msra.mxu1 %v2880_v18  ;;  %v2674_v6 = vadd.s32 3, %v2490_v5  ;;  %v2494_v54 = vand.u32 3, %v2490_v5 }
 0x75f   : > { %3043 = vmatprep.subr.mxu0 %v3205_v2  ;;  %3050 = vmatprep.subr.mxu1 %v3205_v2  ;;  %v3136_v45 = vpop.eup %3135  ;;  %v2485_v3 = vxor.u32 2147483648, %v2484_v61 }
 0x760   : > { %3044 = vmatpush3.msra.mxu0 %v2872_v39  ;;  %3045 = vmatprep.mubr.msk.f32.mxu0 %vm3206_vm0, %v3205_v2  ;;  %v3138_v29 = vpop.eup %3137  ;;  %v2138_v7 = vxor.u32 2147483648, %v3136_v45  ;;  %v2675_v8 = vand.u32 3, %v2674_v6  ;;  %vm2499_vm4 = vcmp.eq.s32.totalorder %v2494_v54, 2  ;;  %vm2496_vm6 = vcmp.eq.s32.totalorder %v2494_v54, 0 }
 0x761   : > { %3051 = vmatpush3.msra.mxu1 %v2879_v19  ;;  %3052 = vmatprep.mubr.msk.f32.mxu1 %vm3206_vm0, %v3205_v2  ;;  %v2135_v11 = vxor.u32 2147483648, %v3138_v29  ;;  %v2486_v4 = vsel %vm2403_vm2, %v2485_v3, %v2484_v61 }
 0x762   : > { %3055 = vmatprep.subr.mxu0 %v3205_v2  ;;  %3062 = vmatprep.subr.mxu1 %v3205_v2  ;;  %v2139_v51 = vsel %vm2137_vm11, %v2138_v7, %v3138_v29  ;;  %v2320_v53 = vsel %vm2318_vm12, %v2138_v7, %v3138_v29  ;;  %v2489_v48 = vsel %vm2402_vm3, %v3516_v24, %v2486_v4  ;;  %vm2680_vm5 = vcmp.eq.s32.totalorder %v2675_v8, 2 }
 0x763   : > { %v2136_v56 = vsel %vm2134_vm10, %v3136_v45, %v2135_v11  ;;  %v2317_v55 = vsel %vm2315_vm14, %v3136_v45, %v2135_v11  ;;  %3139 = vcosq.f32 %v2489_v48  ;;  %vm2677_vm7 = vcmp.eq.s32.totalorder %v2675_v8, 0 }
 0x764   : > { %v2140_v59 = vsel %vm2133_vm9, %v2136_v56, %v2139_v51  ;;  %v2321_v22 = vsel %vm2314_vm13, %v2317_v55, %v2320_v53  ;;  %3141 = vsinq.f32 %v2489_v48  ;;  %vm2676_vm8 = vcmp.lt.s32.totalorder %v2675_v8, 2 }
 0x765   : > { %v2141_v50 = vsel %vm2131_vm15, nan, %v2140_v59  ;;  %v2322_v0 = vsel %vm2131_vm15, nan, %v2321_v22  ;;  %vm2493_vm9 = vweird.f32 %v3516_v24  ;;  %v1678_v24 = vld [vmem:[%s3771_s17] sm:$0x1] }
 0x766   : > { %3046 = vmatmul.mubr.msk.f32.vlgmr.msra.gmra.mxu0 %vm662_vm1, %v2141_v50  ;;  %3053 = vmatmul.mubr.msk.f32.vlgmr.msra.gmra.mxu1 %vm662_vm1, %v2322_v0 }
 0x767   : > { %3056 = vmatpush3.msra.mxu0 %v2887_v62  ;;  %3063 = vmatpush3.msra.mxu1 %v2894_v63 }
 0x768   : > { %3057 = vmatprep.subr.mxu0 %v3205_v2  ;;  %3064 = vmatprep.subr.mxu1 %v3205_v2 }
 0x769   : > { %3058 = vmatpush3.msra.mxu0 %v2886_v23  ;;  %3059 = vmatprep.mubr.msk.f32.mxu0 %vm3206_vm0, %v3205_v2 }
 0x76a   : > { %3065 = vmatpush3.msra.mxu1 %v2893_v1  ;;  %3066 = vmatprep.mubr.msk.f32.mxu1 %vm3206_vm0, %v3205_v2  ;;  %vm2495_vm0 = vcmp.lt.s32.totalorder %v2494_v54, 2 }
 0x770   : > { %v3140_v10 = vpop.eup %3139 }
 0x771   : > { %v3142_v12 = vpop.eup %3141  ;;  %v2500_v13 = vxor.u32 2147483648, %v3140_v10 }
 0x772   : > { %v2497_v27 = vxor.u32 2147483648, %v3142_v12 }
 0x773   : > { %v2501_v17 = vsel %vm2499_vm4, %v2500_v13, %v3142_v12  ;;  %v2682_v2 = vsel %vm2680_vm5, %v2500_v13, %v3142_v12 }
 0x774   : > { %v2498_v14 = vsel %vm2496_vm6, %v3140_v10, %v2497_v27  ;;  %v2679_v46 = vsel %vm2677_vm7, %v3140_v10, %v2497_v27 }
 0x775   : > { %v2502_v60 = vsel %vm2495_vm0, %v2498_v14, %v2501_v17  ;;  %v2683_v15 = vsel %vm2676_vm8, %v2679_v46, %v2682_v2 }
 0x776   : > { %v2503_v16 = vsel %vm2493_vm9, nan, %v2502_v60  ;;  %v2684_v20 = vsel %vm2493_vm9, nan, %v2683_v15 }
 0x777   : > { %3060 = vmatmul.mubr.msk.f32.vlgmr.msra.gmra.mxu0 %vm662_vm1, %v2503_v16  ;;  %3067 = vmatmul.mubr.msk.f32.vlgmr.msra.gmra.mxu1 %vm662_vm1, %v2684_v20  ;;  %vm2762_vm1 = vcmask 24576  }
 0x81d   : > { %v1853_v43 = vpop.f32.mrf.mxu0  ;;  %v2033_v21 = vpop.f32.mrf.mxu1 }
 0x81e   : > { %v1857_v34 = vadd.f32 %v1853_v43, %v1678_v24 }
 0x81f   : > { %v3033_v26 = vpop.f32.mrf.mxu0  ;;  %v3040_v28 = vpop.f32.mrf.mxu1 }
 0x820   : > { %v2037_v36 = vadd.f32 %v2033_v21, %v1857_v34 }
 0x826   : > { %v2214_v31 = vpop.f32.mrf.mxu0  ;;  %v2395_v18 = vpop.f32.mrf.mxu1 }
 0x827   : > { %v2218_v37 = vadd.f32 %v2214_v31, %v2037_v36 }
 0x828   : > { %v3047_v32 = vpop.f32.mrf.mxu0  ;;  %v3054_v33 = vpop.f32.mrf.mxu1 }
 0x829   : > { %v2399_v38 = vadd.f32 %v2395_v18, %v2218_v37 }
 0x837   : > { %v2576_v39 = vpop.f32.mrf.mxu0  ;;  %v2757_v40 = vpop.f32.mrf.mxu1 }
 0x838   : > { %v2580_v19 = vadd.f32 %v2576_v39, %v2399_v38 }
 0x839   : > { %v3061_v41 = vpop.f32.mrf.mxu0  ;;  %v3068_v44 = vpop.f32.mrf.mxu1 }
 0x83a   : > { %v2761_v25 = vadd.f32 %v2757_v40, %v2580_v19 }
 0x83c   : > { %2763 = vst.msk [vmem:[%s567_s26] sm:$0x1] %vm2762_vm1, %v2761_v25 }
 0x83d   : > { %3156 = shalt.err (!%p3153_p3)
}
 0x83e   : > { %s3157_s5 = scalar_lea.hbm %s2775_s0, 16  ;;  %s3161_s26 = scalar_lea.hbm %s3772_s18, 32 }
 0x83f   : > { %p3158_p4 = scmp.ne.s32.totalorder %s2775_s0, %s3157_s5  ;;  %p3162_p9 = scmp.lt.s32.totalorder %s2775_s0, %s3772_s18 }
 0x840   : > { %p3163_p10 = scmp.lt.s32.totalorder %s3161_s26, %s3157_s5 }
 0x841   : > { %p3159_p7 = pnand %p3158_p4, %p3351_p5 }
 0x842   : > { %p3164_p11 = por %p3163_p10, %p3162_p9 }
 0x843   : > { %p3160_p8 = pneg %p3159_p7 }
 0x845   : > { %p3165_p12 = pnand %p3164_p11, %p3160_p8 }
 0x847   : > { %3168 = shalt.err (!%p3165_p12)
}
 0x848   : > { %3081 = dma.vmem_to_hbm [thread:$0]  (%p3351_p5), %s2778_s28, 16, %s2775_s0, %s2765_s27  }
 0x849 PF: > { %p3087_p13 = scmp.ge.s32.totalorder %s3203_s19, 2  ;;  %s2789_s3 = sand.u32 1, %s3191_s29  }
 0x84a   : > { %s2790_s4 = scalar_lea.sflag [#allocation4], %s2789_s3 }
 0x84b   : > { %p3084_p0 = pnand %p3087_p13, %p3355_p6 }
 0x84d   : > { %p3085_p1 = pneg %p3084_p0 }
 0x84f   : > { %3186 = dma.done.wait (%p3085_p1), %s2790_s4, 16  }
 0x850   : > { %3188 = vsyncadd (%p3085_p1), %s2790_s4, 4294967280  ;;  %s3799_s19 = sld [smem:[#allocation7_spill]]  ;;  %s3802_s29 = smov %s3195_s30 }
 0x851   : > { %s3800_s5 = sld [smem:[#allocation6_spill]] }
 0x852   : > { %s3801_s0 = sld [smem:[#allocation8_spill]] }
 0x856   : > { %p30_p2 = scmp.ge.s32.totalorder %s3799_s19, 4  }
 0x857   : > { %s3803_s30 = smov %s3800_s5 }
 0x858   :  { %32 = sbr.rel (!%p30_p2) target bundleno = 10 (0xa), region = 135 }
 0x85d   :  { %2794 = vsyncpa [#allocation4], 1 }
 0x85e   :  { %2796 = vsyncpa [#allocation4 + $0x1], 1 }

</bundles_post_ra>
